<compile_context>
chip_gen: v7x
topology: tpu7x:2x2x1
jax: 0.10.0
libtpu: 0.0.40
codegen_flags: <defaults>
</compile_context>

<pallas_src>
import functools

import jax
import jax.numpy as jnp
from jax.experimental import pallas as pl
from jax.experimental.pallas import tpu as pltpu

HIDDEN = 128  # fixed by the PyTorch module (nn.Linear(state_size, 128), ...)


def _round_up(x, m):
    return ((x + m - 1) // m) * m


def a3c_kernel(x_ref, w1_ref, b1_ref, w2_ref, b2_ref, wh_ref, bh_ref,
               out_ref, *, action_size):
    x = x_ref[...]                                   # (TB, S) f32

    # fc1 + relu  (bf16 operands -> MXU, f32 accumulate, f32 elementwise)
    h1 = jnp.dot(x.astype(jnp.bfloat16), w1_ref[...],
                 preferred_element_type=jnp.float32) + b1_ref[...]
    h1 = jnp.maximum(h1, 0.0)

    # fc2 + relu
    h2 = jnp.dot(h1.astype(jnp.bfloat16), w2_ref[...],
                 preferred_element_type=jnp.float32) + b2_ref[...]
    h2 = jnp.maximum(h2, 0.0)

    # fused actor|critic head: one (TB, HIDDEN) @ (HIDDEN, 128) matmul.
    # lanes [0:A] = actor logits, lane A = critic value, lanes > A = 0 (padding).
    head = jnp.dot(h2.astype(jnp.bfloat16), wh_ref[...],
                   preferred_element_type=jnp.float32) + bh_ref[...]

    lane = jax.lax.broadcasted_iota(jnp.int32, head.shape, dimension=1)
    is_policy = lane < action_size

    # softmax over the real action lanes only
    logits = jnp.where(is_policy, head, -1e30)
    m = jnp.max(logits, axis=-1, keepdims=True)
    e = jnp.exp(logits - m)
    s = jnp.sum(e, axis=-1, keepdims=True)
    inv = pl.reciprocal(s, approx=True)              # EUP, otherwise idle here
    policy = e * inv

    # lane-dense fused output slab: policy in [0:A], value in lane A, 0 after.
    out_ref[...] = jnp.where(is_policy, policy, head)


def a3c_forward(x, params, *, tb=256):
    """x: (B, state_size) float32. params from init_params (PyTorch-style f32).

    Returns (policy (B, action_size), value (B, 1)).
    """
    B, S = x.shape
    action_size = params["wa"].shape[1]
    hidden = params["w2"].shape[0]
    head_pad = _round_up(action_size + 1, 128)       # lane-dense output width

    # ---- parameter prep (fused + padded head, bf16 matmul operands) ----
    w1 = params["w1"].astype(jnp.bfloat16)
    w2 = params["w2"].astype(jnp.bfloat16)
    b1 = params["b1"].astype(jnp.float32)
    b2 = params["b2"].astype(jnp.float32)
    wh = jnp.concatenate([params["wa"], params["wc"]], axis=1)      # (H, A+1)
    bh = jnp.concatenate([params["ba"], params["bc"]], axis=1)      # (1, A+1)
    pad = head_pad - (action_size + 1)
    wh = jnp.pad(wh, ((0, 0), (0, pad))).astype(jnp.bfloat16)       # (H, 128)
    bh = jnp.pad(bh, ((0, 0), (0, pad))).astype(jnp.float32)        # (1, 128)

    # ---- batch tiling / padding ----
    tb = min(tb, _round_up(B, 8))
    Bp = _round_up(B, tb)
    xp = x if Bp == B else jnp.pad(x, ((0, Bp - B), (0, 0)))
    grid = (Bp // tb,)

    out = pl.pallas_call(
        functools.partial(a3c_kernel, action_size=action_size),
        out_shape=jax.ShapeDtypeStruct((Bp, head_pad), jnp.float32),
        grid=grid,
        in_specs=[
            pl.BlockSpec((tb, S), lambda i: (i, 0)),            # x tile streams
            pl.BlockSpec((S, hidden), lambda i: (0, 0)),        # weights stay
            pl.BlockSpec((1, hidden), lambda i: (0, 0)),        # resident in
            pl.BlockSpec((hidden, hidden), lambda i: (0, 0)),   # VMEM across
            pl.BlockSpec((1, hidden), lambda i: (0, 0)),        # grid steps
            pl.BlockSpec((hidden, head_pad), lambda i: (0, 0)),
            pl.BlockSpec((1, head_pad), lambda i: (0, 0)),
        ],
        out_specs=pl.BlockSpec((tb, head_pad), lambda i: (i, 0)),
        compiler_params=pltpu.CompilerParams(
            dimension_semantics=("parallel",)),
    )(xp, w1, b1, w2, b2, wh, bh)

    policy = out[:B, :action_size]
    value = out[:B, action_size:action_size + 1]
    return policy, value


def init_params(key, state_size, action_size, hidden=HIDDEN):
    """Deterministic init mimicking nn.Linear defaults (uniform +-1/sqrt(fan_in)).
    Weights stored as (in_features, out_features), biases as (1, out_features)."""
    def linear(k, fan_in, fan_out):
        kw, kb = jax.random.split(k)
        bound = 1.0 / jnp.sqrt(float(fan_in))
        w = jax.random.uniform(kw, (fan_in, fan_out), jnp.float32, -bound, bound)
        b = jax.random.uniform(kb, (1, fan_out), jnp.float32, -bound, bound)
        return w, b

    k1, k2, k3, k4 = jax.random.split(key, 4)
    w1, b1 = linear(k1, state_size, hidden)
    w2, b2 = linear(k2, hidden, hidden)
    wa, ba = linear(k3, hidden, action_size)
    wc, bc = linear(k4, hidden, 1)
    return {"w1": w1, "b1": b1, "w2": w2, "b2": b2,
            "wa": wa, "ba": ba, "wc": wc, "bc": bc}


def a3c_reference(x, p):
    """Plain-JAX reference with the same bf16-at-matmul numerics as the kernel."""
    def mm(a, w):
        return jnp.dot(a.astype(jnp.bfloat16), w.astype(jnp.bfloat16),
                       preferred_element_type=jnp.float32)
    h1 = jnp.maximum(mm(x, p["w1"]) + p["b1"], 0.0)
    h2 = jnp.maximum(mm(h1, p["w2"]) + p["b2"], 0.0)
    policy = jax.nn.softmax(mm(h2, p["wa"]) + p["ba"], axis=-1)
    value = mm(h2, p["wc"]) + p["bc"]
    return policy, value


if __name__ == "__main__":
    key = jax.random.PRNGKey(0)
    k_x, k_p = jax.random.split(key)

    batch = 512          # two 256-row grid steps
    state_size = 16
    action_size = 8

    x = jax.random.normal(k_x, (batch, state_size), jnp.float32)
    params = init_params(k_p, state_size, action_size)

    policy, value = a3c_forward(x, params, tb=256)
    jax.block_until_ready((policy, value))

    # sanity check against plain-JAX reference (bf16 matmuls + approx recip -> loose tol)
    ref_policy, ref_value = a3c_reference(x, params)
    assert policy.shape == (batch, action_size)
    assert value.shape == (batch, 1)
    assert jnp.allclose(policy, ref_policy, atol=3e-3, rtol=3e-3), (
        float(jnp.max(jnp.abs(policy - ref_policy))))
    assert jnp.allclose(value, ref_value, atol=3e-3, rtol=3e-3), (
        float(jnp.max(jnp.abs(value - ref_value))))
    assert jnp.allclose(jnp.sum(policy, axis=-1), 1.0, atol=5e-3)

    print("KERNEL_OK")
</pallas_src>

<mosaic_0001>
module attributes {stable_mosaic.version = 11 : i64} {
  func.func @a3c_kernel(%arg0: i32, %arg1: memref<256x16xf32, #tpu.memory_space<vmem>>, %arg2: memref<16x128xbf16, #tpu.memory_space<vmem>>, %arg3: memref<1x128xf32, #tpu.memory_space<vmem>>, %arg4: memref<128x128xbf16, #tpu.memory_space<vmem>>, %arg5: memref<1x128xf32, #tpu.memory_space<vmem>>, %arg6: memref<128x128xbf16, #tpu.memory_space<vmem>>, %arg7: memref<1x128xf32, #tpu.memory_space<vmem>>, %arg8: memref<256x128xf32, #tpu.memory_space<vmem>>) attributes {dimension_semantics = [#tpu.dimension_semantics<parallel>], iteration_bounds = array<i64: 2>, scalar_prefetch = 0 : i64, scratch_operands = 0 : i64, tpu.core_type = #tpu.core_type<tc>, window_params = [{transform_indices = @transform_0, window_bounds = array<i64: 256, 16>}, {pipeline_mode = #tpu.pipeline_mode<synchronous>, transform_indices = @transform_1, window_bounds = array<i64: 16, 128>}, {pipeline_mode = #tpu.pipeline_mode<synchronous>, transform_indices = @transform_2, window_bounds = array<i64: 1, 128>}, {pipeline_mode = #tpu.pipeline_mode<synchronous>, transform_indices = @transform_3, window_bounds = array<i64: 128, 128>}, {pipeline_mode = #tpu.pipeline_mode<synchronous>, transform_indices = @transform_4, window_bounds = array<i64: 1, 128>}, {pipeline_mode = #tpu.pipeline_mode<synchronous>, transform_indices = @transform_5, window_bounds = array<i64: 128, 128>}, {pipeline_mode = #tpu.pipeline_mode<synchronous>, transform_indices = @transform_6, window_bounds = array<i64: 1, 128>}, {transform_indices = @transform_7, window_bounds = array<i64: 256, 128>}]} {
    %c0 = arith.constant 0 : index
    %c0_0 = arith.constant 0 : index
    %0 = vector.load %arg1[%c0, %c0_0] : memref<256x16xf32, #tpu.memory_space<vmem>>, vector<256x16xf32>
    %1 = arith.truncf %0 : vector<256x16xf32> to vector<256x16xbf16>
    %c0_1 = arith.constant 0 : index
    %c0_2 = arith.constant 0 : index
    %2 = vector.load %arg2[%c0_1, %c0_2] : memref<16x128xbf16, #tpu.memory_space<vmem>>, vector<16x128xbf16>
    %cst = arith.constant dense<0.000000e+00> : vector<256x128xf32>
    %3 = tpu.matmul %1, %2, %cst {dimension_numbers = #tpu.dot_dimension_numbers<[1], [0], [0], [1], [0, 0, 1, 1], [], []>} : vector<256x16xbf16>, vector<16x128xbf16>, vector<256x128xf32> -> vector<256x128xf32>
    %c0_3 = arith.constant 0 : index
    %c0_4 = arith.constant 0 : index
    %4 = vector.load %arg3[%c0_3, %c0_4] : memref<1x128xf32, #tpu.memory_space<vmem>>, vector<1x128xf32>
    %5 = vector.broadcast %4 : vector<1x128xf32> to vector<256x128xf32>
    %6 = arith.addf %3, %5 : vector<256x128xf32>
    %cst_5 = arith.constant 0.000000e+00 : f32
    %7 = vector.broadcast %cst_5 : f32 to vector<256x128xf32>
    %8 = arith.maximumf %6, %7 : vector<256x128xf32>
    %9 = arith.truncf %8 : vector<256x128xf32> to vector<256x128xbf16>
    %c0_6 = arith.constant 0 : index
    %c0_7 = arith.constant 0 : index
    %10 = vector.load %arg4[%c0_6, %c0_7] : memref<128x128xbf16, #tpu.memory_space<vmem>>, vector<128x128xbf16>
    %cst_8 = arith.constant dense<0.000000e+00> : vector<256x128xf32>
    %11 = tpu.matmul %9, %10, %cst_8 {dimension_numbers = #tpu.dot_dimension_numbers<[1], [0], [0], [1], [0, 0, 1, 1], [], []>} : vector<256x128xbf16>, vector<128x128xbf16>, vector<256x128xf32> -> vector<256x128xf32>
    %c0_9 = arith.constant 0 : index
    %c0_10 = arith.constant 0 : index
    %12 = vector.load %arg5[%c0_9, %c0_10] : memref<1x128xf32, #tpu.memory_space<vmem>>, vector<1x128xf32>
    %13 = vector.broadcast %12 : vector<1x128xf32> to vector<256x128xf32>
    %14 = arith.addf %11, %13 : vector<256x128xf32>
    %cst_11 = arith.constant 0.000000e+00 : f32
    %15 = vector.broadcast %cst_11 : f32 to vector<256x128xf32>
    %16 = arith.maximumf %14, %15 : vector<256x128xf32>
    %17 = arith.truncf %16 : vector<256x128xf32> to vector<256x128xbf16>
    %c0_12 = arith.constant 0 : index
    %c0_13 = arith.constant 0 : index
    %18 = vector.load %arg6[%c0_12, %c0_13] : memref<128x128xbf16, #tpu.memory_space<vmem>>, vector<128x128xbf16>
    %cst_14 = arith.constant dense<0.000000e+00> : vector<256x128xf32>
    %19 = tpu.matmul %17, %18, %cst_14 {dimension_numbers = #tpu.dot_dimension_numbers<[1], [0], [0], [1], [0, 0, 1, 1], [], []>} : vector<256x128xbf16>, vector<128x128xbf16>, vector<256x128xf32> -> vector<256x128xf32>
    %c0_15 = arith.constant 0 : index
    %c0_16 = arith.constant 0 : index
    %20 = vector.load %arg7[%c0_15, %c0_16] : memref<1x128xf32, #tpu.memory_space<vmem>>, vector<1x128xf32>
    %21 = vector.broadcast %20 : vector<1x128xf32> to vector<256x128xf32>
    %22 = arith.addf %19, %21 : vector<256x128xf32>
    %23 = tpu.iota {dimensions = array<i32: 1>} : vector<256x128xi32>
    %c8_i32 = arith.constant 8 : i32
    %24 = vector.broadcast %c8_i32 : i32 to vector<256x128xi32>
    %25 = arith.cmpi slt, %23, %24 : vector<256x128xi32>
    %cst_17 = arith.constant -1.000000e+30 : f32
    %26 = vector.broadcast %cst_17 : f32 to vector<256x128xf32>
    %27 = arith.select %25, %22, %26 : vector<256x128xi1>, vector<256x128xf32>
    %cst_18 = arith.constant dense<0xFF800000> : vector<256xf32>
    %28 = vector.multi_reduction <maximumf>, %27, %cst_18 [1] : vector<256x128xf32> to vector<256xf32>
    %29 = vector.shape_cast %28 : vector<256xf32> to vector<256x1xf32>
    %30 = vector.broadcast %29 : vector<256x1xf32> to vector<256x128xf32>
    %31 = arith.subf %27, %30 : vector<256x128xf32>
    %32 = math.exp %31 : vector<256x128xf32>
    %cst_19 = arith.constant dense<0.000000e+00> : vector<256xf32>
    %33 = vector.multi_reduction <add>, %32, %cst_19 [1] : vector<256x128xf32> to vector<256xf32>
    %34 = vector.shape_cast %33 : vector<256xf32> to vector<256x1xf32>
    %35 = tpu.reciprocal %34 {approx = true} : vector<256x1xf32> -> vector<256x1xf32>
    %36 = vector.broadcast %35 : vector<256x1xf32> to vector<256x128xf32>
    %37 = arith.mulf %32, %36 : vector<256x128xf32>
    %38 = arith.select %25, %37, %22 : vector<256x128xi1>, vector<256x128xf32>
    %c0_20 = arith.constant 0 : index
    %c0_21 = arith.constant 0 : index
    %39 = vector.load %arg8[%c0_20, %c0_21] : memref<256x128xf32, #tpu.memory_space<vmem>>, vector<256x128xf32>
    tpu.vector_store %arg8[%c0_20, %c0_21], %38 {strides = array<i32>} : memref<256x128xf32, #tpu.memory_space<vmem>>, vector<256x128xf32>,
    return
  }
  func.func @transform_0(%arg0: i32) -> (i32, i32) {
    %c0_i32 = arith.constant 0 : i32
    %c0_i32_0 = arith.constant 0 : i32
    return %arg0, %c0_i32 : i32, i32
  }
  func.func @transform_1(%arg0: i32) -> (i32, i32) {
    %c0_i32 = arith.constant 0 : i32
    %c0_i32_0 = arith.constant 0 : i32
    %c0_i32_1 = arith.constant 0 : i32
    return %c0_i32, %c0_i32_0 : i32, i32
  }
  func.func @transform_2(%arg0: i32) -> (i32, i32) {
    %c0_i32 = arith.constant 0 : i32
    %c0_i32_0 = arith.constant 0 : i32
    %c0_i32_1 = arith.constant 0 : i32
    return %c0_i32, %c0_i32_0 : i32, i32
  }
  func.func @transform_3(%arg0: i32) -> (i32, i32) {
    %c0_i32 = arith.constant 0 : i32
    %c0_i32_0 = arith.constant 0 : i32
    %c0_i32_1 = arith.constant 0 : i32
    return %c0_i32, %c0_i32_0 : i32, i32
  }
  func.func @transform_4(%arg0: i32) -> (i32, i32) {
    %c0_i32 = arith.constant 0 : i32
    %c0_i32_0 = arith.constant 0 : i32
    %c0_i32_1 = arith.constant 0 : i32
    return %c0_i32, %c0_i32_0 : i32, i32
  }
  func.func @transform_5(%arg0: i32) -> (i32, i32) {
    %c0_i32 = arith.constant 0 : i32
    %c0_i32_0 = arith.constant 0 : i32
    %c0_i32_1 = arith.constant 0 : i32
    return %c0_i32, %c0_i32_0 : i32, i32
  }
  func.func @transform_6(%arg0: i32) -> (i32, i32) {
    %c0_i32 = arith.constant 0 : i32
    %c0_i32_0 = arith.constant 0 : i32
    %c0_i32_1 = arith.constant 0 : i32
    return %c0_i32, %c0_i32_0 : i32, i32
  }
  func.func @transform_7(%arg0: i32) -> (i32, i32) {
    %c0_i32 = arith.constant 0 : i32
    %c0_i32_0 = arith.constant 0 : i32
    return %arg0, %c0_i32 : i32, i32
  }
}

</mosaic_0001>

<bundles_post_ra>
// kernel: tpu_custom_call.1
= control target key start
LH: loop header
LB: loop body
LE: loop exit
PB: predicated region body
PF: predicated region fallthrough
CT: control target
= control target key end

     0   :  { %12 = vsyncpa [#allocation3], 0  ;;  %s2990_s0 = inlined_call_operand.vmem [shape: f32[512,16], index: 0, kind: input, shape index: {}]   ;;  %s2991_s1 = inlined_call_operand.vmem [shape: bf16[16,128], index: 1, kind: input, shape index: {}]   ;;  %s2992_s2 = inlined_call_operand.vmem [shape: f32[1,128], index: 2, kind: input, shape index: {}]   ;;  %s2993_s3 = inlined_call_operand.vmem [shape: bf16[128,128], index: 3, kind: input, shape index: {}]   ;;  %s2994_s4 = inlined_call_operand.vmem [shape: f32[1,128], index: 4, kind: input, shape index: {}]   ;;  %s2995_s5 = inlined_call_operand.vmem [shape: bf16[128,128], index: 5, kind: input, shape index: {}]   ;;  %s2996_s6 = inlined_call_operand.vmem [shape: f32[1,128], index: 6, kind: input, shape index: {}]   ;;  %s2997_s7 = inlined_call_operand.hbm [shape: f32[512,128], index: 7, kind: output, shape index: {}]  }
   0x1   :  { %14 = vsyncpa [#allocation3 + $0x1], 0  ;;  %s2116_s24 = smov 0   ;;  %s2118_s25 = smov 0  }
   0x2   :  { %s2120_s26 = smov 0   ;;  %s2122_s27 = smov 0  }
   0x3 LB: > { %s2137_s28 = sadd.s32 4294967295, %s2071_s27   ;;  %s1577_s29 = sadd.s32 4294967294, %s2071_s27   ;;  %s2071_s27 = sphi %s2122_s27, %s3048_s27   ;;  %s2067_s26 = sphi %s2120_s26, %s3047_s26   ;;  %s2063_s25 = sphi %s2118_s25, %s3046_s25   ;;  %s2059_s24 = sphi %s2116_s24, %s3045_s24  }
   0x4   : > { %s2141_s30 = sadd.s32 1, %s2071_s27   ;;  %s179_s8 = sadd.s32 1, %s2067_s26 }
   0x5   : > { %s176_s9 = ssub.s32 %s2071_s27, %s2141_s30  ;;  %p189_p0 = scmp.ne.s32.totalorder %s2067_s26, %s2063_s25 }
   0x6   : > { %p177_p1 = scmp.eq.s32.totalorder %s176_s9, 0  ;;  %p190_p2 = scmp.eq.s32.totalorder %s2137_s28, 1 }
   0x7   : > { %p195_p3 = scmp.ne.s32.totalorder %s2063_s25, %s2059_s24  ;;  %p196_p4 = scmp.eq.s32.totalorder %s1577_s29, 1 }
   0x8   : > { %s2152_s10 = scalar_select %p177_p1, %s2067_s26, %s179_s8  }
   0x9   : > { %p2154_p5 = por %p190_p2, %p189_p0  ;;  %p2158_p6 = por %p196_p4, %p195_p3 }
   0xa   : > { %p1580_p7 = scmp.ge.s32.totalorder %s2071_s27, 1  ;;  %p241_p8 = scmp.lt.s32.totalorder %s2071_s27, 3 }
   0xc   : > { %p242_p9 = pnand %p1580_p7, %p241_p8 }
   0xe   : > { %245 = sbr.rel (%p242_p9) target bundleno = 1082 (0x43a), region = 48 }
  0x15   : > { %v1864_v0 = vld [vmem:[%s2991_s1] sm:$0xff]   ;;  %s1582_s15 = sshll.u32 %s2137_s28, 5  ;;  %vm344_vm0 = vcmask 130048   ;;  %v1866_v23 = vld [vmem:[%s2993_s3 + $0x8] sm:$0xff]   ;;  %v1867_v28 = vld [vmem:[%s2993_s3 + $0x10] sm:$0xff]   ;;  %s270_s16 = sand.u32 1, %s2063_s25  }
  0x16   : > { %p274_p10 = scmp.lt.s32.totalorder %s1582_s15, 63  ;;  %1691 = vmatprep.subr.bf16.mxu0 %v1864_v0  ;;  %1821 = vmatprep.subr.bf16.mxu1 %v1864_v0  ;;  %v1865_v1 = vld [vmem:[%s2993_s3] sm:$0xff]   ;;  %v1868_v37 = vld [vmem:[%s2993_s3 + $0x18] sm:$0xff]   ;;  %v1870_v50 = vld [vmem:[%s2993_s3 + $0x28] sm:$0xff]   ;;  %s1581_s17 = sshll.u32 %s270_s16, 8 }
  0x17   : > { %1692 = vmatpush3.bf16.msra.mxu0 %v1864_v0  ;;  %1822 = vmatpush3.bf16.msra.mxu1 %v1864_v0  ;;  %v1869_v45 = vld [vmem:[%s2993_s3 + $0x20] sm:$0xff]   ;;  %v1871_v55 = vld [vmem:[%s2993_s3 + $0x30] sm:$0xff]   ;;  %v1872_v56 = vld [vmem:[%s2993_s3 + $0x38] sm:$0xff]   ;;  %s1625_s19 = sshll.u32 %s2137_s28, 12  ;;  %s2949_s28 = scalar_lea.sflag [#allocation3], %s270_s16 }
  0x18   : > { %s3050_s15 = smov (!%p274_p10, %s1582_s15), 63  ;;  %1725 = vmatprep.subr.bf16.mxu1 %v1865_v1  ;;  %v1873_v57 = vld [vmem:[%s2995_s5] sm:$0xff]   ;;  %v1874_v58 = vld [vmem:[%s2995_s5 + $0x8] sm:$0xff]   ;;  %v1875_v59 = vld [vmem:[%s2995_s5 + $0x10] sm:$0xff]   ;;  %s2939_s23 = scalar_lea.hbm %s2997_s7, %s1625_s19 }
  0x19   : > { %s1583_s18 = sshll.u32 %s3050_s15, 3  ;;  %1773 = vmatprep.subr.bf16.mxu0 %v1873_v57  ;;  %v1876_v60 = vld [vmem:[%s2995_s5 + $0x18] sm:$0xff]   ;;  %v1877_v61 = vld [vmem:[%s2995_s5 + $0x20] sm:$0xff]   ;;  %v1878_v62 = vld [vmem:[%s2995_s5 + $0x28] sm:$0xff]   ;;  %s2073_s8 = smov [#allocation2]  }
  0x1a   : > { %s2174_s21 = scalar_lea.vmem %s2990_s0, %s1583_s18  ;;  %v2266_v63 = vld [vmem:[%s2992_s2] ss:$0 sm:$0xff]  ;;  %s2780_s18 = scalar_lea.vmem [#allocation2], %s1581_s17 }
  0x1b   : > { %v281_v2 = vld [vmem:[%s2174_s21] sm:$0xff]  ;;  %v282_v3 = vld [vmem:[%s2174_s21 + $0x8] sm:$0xff]  ;;  %v283_v4 = vld [vmem:[%s2174_s21 + $0x10] sm:$0xff]  ;;  %s1515_s20 = sshll.u32 %s2780_s18, 4  ;;  %s2013_s9 = sshll.u32 %s2073_s8, 4  ;;  %s2941_s20 = int_to_ptr.vmem [resolvable:$true] %s1515_s20  ;;  %s2014_s9 = int_to_ptr.vmem [resolvable:$false] %s2013_s9 }
  0x1c   : > { %v313_v5 = vpack.c.bf16 %v282_v3, %v281_v2  ;;  %v284_v6 = vld [vmem:[%s2174_s21 + $0x18] sm:$0xff]  ;;  %v285_v7 = vld [vmem:[%s2174_s21 + $0x20] sm:$0xff]  ;;  %v286_v8 = vld [vmem:[%s2174_s21 + $0x28] sm:$0xff]  ;;  %s2009_s29 = scalar_lea.vmem %s2941_s20, 4096  ;;  %s2015_s13 = scalar_lea.vmem %s2014_s9, 8192 }
  0x1d   : > { %v314_v9 = vpack.c.bf16 %v284_v6, %v283_v4  ;;  %v315_v10 = vpack.c.bf16 %v286_v8, %v285_v7  ;;  %v287_v11 = vld [vmem:[%s2174_s21 + $0x30] sm:$0xff]  ;;  %v288_v12 = vld [vmem:[%s2174_s21 + $0x38] sm:$0xff]  ;;  %v289_v13 = vld [vmem:[%s2174_s21 + $0x40] sm:$0xff]  ;;  %p2010_p11 = scmp.ne.s32.totalorder %s2941_s20, %s2009_s29  ;;  %p2016_p0 = scmp.lt.s32.totalorder %s2941_s20, %s2014_s9 }
  0x1e   : > { %1693 = vmatprep.mubr.msk.bf16.mxu0 %vm344_vm0, %v313_v5  ;;  %v290_v14 = vld [vmem:[%s2174_s21 + $0x48] sm:$0xff]  ;;  %v297_v15 = vld [vmem:[%s2174_s21 + $0x80] sm:$0xff]  ;;  %v299_v18 = vld [vmem:[%s2174_s21 + $0x90] sm:$0xff]  ;;  %v316_v24 = vpack.c.bf16 %v288_v12, %v287_v11  ;;  %p2017_p1 = scmp.lt.s32.totalorder %s2015_s13, %s2009_s29 }
  0x1f   : > { %1694 = vmatmul.mubr.msk.bf16.vlgmr.msra.gmra.mrb[0].mxu0 %vm344_vm0, %v314_v9  ;;  %v298_v16 = vld [vmem:[%s2174_s21 + $0x88] sm:$0xff]  ;;  %v300_v19 = vld [vmem:[%s2174_s21 + $0x98] sm:$0xff]  ;;  %v301_v20 = vld [vmem:[%s2174_s21 + $0xa0] sm:$0xff]  ;;  %v317_v26 = vpack.c.bf16 %v290_v14, %v289_v13  ;;  %p2011_p12 = pnand %p2010_p11, %p2154_p5 }
  0x20   : > { %1697 = vmatprep.mubr.msk.bf16.mxu0 %vm344_vm0, %v315_v10  ;;  %v321_v17 = vpack.c.bf16 %v298_v16, %v297_v15  ;;  %v322_v21 = vpack.c.bf16 %v300_v19, %v299_v18  ;;  %v302_v22 = vld [vmem:[%s2174_s21 + $0xa8] sm:$0xff]  ;;  %v303_v27 = vld [vmem:[%s2174_s21 + $0xb0] sm:$0xff]  ;;  %v304_v29 = vld [vmem:[%s2174_s21 + $0xb8] sm:$0xff]  ;;  %1774 = vmatpush3.bf16.msra.mxu0 %v1873_v57  ;;  %p2018_p2 = por %p2017_p1, %p2016_p0 }
  0x21   : > { %v323_v25 = vpack.c.bf16 %v302_v22, %v301_v20  ;;  %v305_v30 = vld [vmem:[%s2174_s21 + $0xc0] sm:$0xff]  ;;  %v306_v31 = vld [vmem:[%s2174_s21 + $0xc8] sm:$0xff]  ;;  %v291_v32 = vld [vmem:[%s2174_s21 + $0x50] sm:$0xff]  ;;  %v324_v36 = vpack.c.bf16 %v304_v29, %v303_v27  ;;  %1775 = vmatprep.subr.bf16.mxu0 %v1874_v58  ;;  %p2012_p13 = pneg %p2011_p12 }
  0x22   : > { %1709 = vmatprep.mubr.msk.bf16.mxu1 %vm344_vm0, %v321_v17  ;;  %v292_v33 = vld [vmem:[%s2174_s21 + $0x58] sm:$0xff]  ;;  %v293_v34 = vld [vmem:[%s2174_s21 + $0x60] sm:$0xff]  ;;  %v294_v35 = vld [vmem:[%s2174_s21 + $0x68] sm:$0xff]  ;;  %v325_v38 = vpack.c.bf16 %v306_v31, %v305_v30 }
  0x23   : > { %1710 = vmatmul.mubr.msk.bf16.vlgmr.msra.gmra.mrb[0].mxu1 %vm344_vm0, %v322_v21  ;;  %v318_v39 = vpack.c.bf16 %v292_v33, %v291_v32  ;;  %v319_v40 = vpack.c.bf16 %v294_v35, %v293_v34  ;;  %v307_v41 = vld [vmem:[%s2174_s21 + $0xd0] sm:$0xff]  ;;  %v308_v42 = vld [vmem:[%s2174_s21 + $0xd8] sm:$0xff]  ;;  %v309_v43 = vld [vmem:[%s2174_s21 + $0xe0] sm:$0xff]  ;;  %p2019_p3 = pnand %p2018_p2, %p2012_p13 }
  0x24   : > { %1713 = vmatprep.mubr.msk.bf16.mxu1 %vm344_vm0, %v323_v25  ;;  %1726 = vmatpush3.bf16.msra.mxu1 %v1865_v1  ;;  %v310_v44 = vld [vmem:[%s2174_s21 + $0xe8] sm:$0xff]  ;;  %v295_v46 = vld [vmem:[%s2174_s21 + $0x70] sm:$0xff]  ;;  %v296_v47 = vld [vmem:[%s2174_s21 + $0x78] sm:$0xff]  ;;  %v326_v48 = vpack.c.bf16 %v308_v42, %v307_v41 }
  0x25   : > { %1727 = vmatprep.subr.bf16.mxu1 %v1866_v23  ;;  %v327_v49 = vpack.c.bf16 %v310_v44, %v309_v43  ;;  %v320_v51 = vpack.c.bf16 %v296_v47, %v295_v46  ;;  %v311_v52 = vld [vmem:[%s2174_s21 + $0xf0] sm:$0xff]  ;;  %v312_v53 = vld [vmem:[%s2174_s21 + $0xf8] sm:$0xff]  ;;  %1776 = vmatpush3.bf16.msra.mxu0 %v1874_v58 }
  0x26   : > { %v328_v54 = vpack.c.bf16 %v312_v53, %v311_v52  ;;  %1777 = vmatprep.subr.bf16.mxu0 %v1875_v59 }
  0x27   : > { %1698 = vmatmul.mubr.msk.bf16.gmra.mrb[4].mxu0 %vm344_vm0, %v316_v24 }
  0x28   : > { %1701 = vmatprep.mubr.msk.bf16.mxu0 %vm344_vm0, %v317_v26  ;;  %1728 = vmatpush3.bf16.msra.mxu1 %v1866_v23 }
  0x29   : > { %1729 = vmatprep.subr.bf16.mxu1 %v1867_v28  ;;  %1778 = vmatpush3.bf16.msra.mxu0 %v1875_v59 }
  0x2a   : > { %1779 = vmatprep.subr.bf16.mxu0 %v1876_v60 }
  0x2b   : > { %1714 = vmatmul.mubr.msk.bf16.gmra.mrb[4].mxu1 %vm344_vm0, %v324_v36 }
  0x2c   : > { %1717 = vmatprep.mubr.msk.bf16.mxu1 %vm344_vm0, %v325_v38  ;;  %1730 = vmatpush3.bf16.msra.mxu1 %v1867_v28 }
  0x2d   : > { %1731 = vmatprep.subr.bf16.mxu1 %v1868_v37  ;;  %1780 = vmatpush3.bf16.msra.mxu0 %v1876_v60 }
  0x2e   : > { %1781 = vmatprep.subr.bf16.mxu0 %v1877_v61 }
  0x2f   : > { %1702 = vmatmul.mubr.msk.bf16.gmra.mrb[8].mxu0 %vm344_vm0, %v318_v39 }
  0x30   : > { %1705 = vmatprep.mubr.msk.bf16.mxu0 %vm344_vm0, %v319_v40  ;;  %1732 = vmatpush3.bf16.msra.mxu1 %v1868_v37 }
  0x31   : > { %1733 = vmatprep.subr.bf16.mxu1 %v1869_v45  ;;  %1782 = vmatpush3.bf16.msra.mxu0 %v1877_v61 }
  0x32   : > { %1783 = vmatprep.subr.bf16.mxu0 %v1878_v62 }
  0x33   : > { %1718 = vmatmul.mubr.msk.bf16.gmra.mrb[8].mxu1 %vm344_vm0, %v326_v48 }
  0x34   : > { %1721 = vmatprep.mubr.msk.bf16.mxu1 %vm344_vm0, %v327_v49  ;;  %1734 = vmatpush3.bf16.msra.mxu1 %v1869_v45 }
  0x35   : > { %1735 = vmatprep.subr.bf16.mxu1 %v1870_v50  ;;  %1784 = vmatpush3.bf16.msra.mxu0 %v1878_v62 }
  0x37   : > { %1706 = vmatmul.mubr.msk.bf16.gmra.mrb[12].mxu0 %vm344_vm0, %v320_v51 }
  0x38   : > { %1736 = vmatpush3.bf16.msra.mxu1 %v1870_v50 }
  0x39   : > { %1737 = vmatprep.subr.bf16.mxu1 %v1871_v55 }
  0x3b   : > { %1722 = vmatmul.mubr.msk.bf16.gmra.mrb[12].mxu1 %vm344_vm0, %v328_v54 }
  0x3c   : > { %1738 = vmatpush3.bf16.msra.mxu1 %v1871_v55 }
  0x3d   : > { %1739 = vmatprep.subr.bf16.mxu1 %v1872_v56 }
  0x40   : > { %1740 = vmatpush3.bf16.msra.mxu1 %v1872_v56 }
  0xf2   : > { %v1695_v0 = vpop.f32.mrb[0].mxu0 }
  0xf3   : > { %v436_v1 = vadd.f32 %v1695_v0, %v2266_v63  ;;  %v427_v2 = vpop.f32.mrb[1].mxu0 }
  0xf4   : > { %v428_v3 = vadd.f32 %v2266_v63, %v427_v2  ;;  %v1696_v4 = vpop.f32.mrb[2].mxu0 }
  0xf5   : > { %v439_v5 = vadd.f32 %v1696_v4, %v2266_v63  ;;  %v430_v6 = vpop.f32.mrb[3].mxu0  ;;  %v556_v8 = vmax.f32 %v436_v1, 0.0 }
  0xf6   : > { %v431_v7 = vadd.f32 %v2266_v63, %v430_v6  ;;  %v1711_v10 = vpop.f32.mrb[0].mxu1  ;;  %v554_v11 = vmax.f32 %v428_v3, 0.0 }
  0xf7   : > { %v557_v9 = vmax.f32 %v439_v5, 0.0  ;;  %v500_v13 = vadd.f32 %v1711_v10, %v2266_v63  ;;  %v491_v14 = vpop.f32.mrb[1].mxu1 }
  0xf8   : > { %v555_v12 = vmax.f32 %v431_v7, 0.0  ;;  %v492_v16 = vadd.f32 %v2266_v63, %v491_v14  ;;  %v1712_v17 = vpop.f32.mrb[2].mxu1 }
  0xf9   : > { %v587_v15 = vpack.c.bf16 %v557_v9, %v556_v8  ;;  %v572_v20 = vmax.f32 %v500_v13, 0.0  ;;  %v503_v21 = vadd.f32 %v1712_v17, %v2266_v63  ;;  %v494_v22 = vpop.f32.mrb[3].mxu1 }
  0xfa   : > { %v586_v18 = vpack.c.bf16 %v555_v12, %v554_v11  ;;  %v1699_v19 = vpop.f32.mrb[4].mxu0  ;;  %v570_v25 = vmax.f32 %v492_v16, 0.0  ;;  %v495_v26 = vadd.f32 %v2266_v63, %v494_v22 }
  0xfb   : > { %v452_v23 = vadd.f32 %v1699_v19, %v2266_v63  ;;  %v443_v24 = vpop.f32.mrb[5].mxu0  ;;  %v573_v29 = vmax.f32 %v503_v21, 0.0 }
  0xfc   : > { %v444_v27 = vadd.f32 %v2266_v63, %v443_v24  ;;  %v1700_v28 = vpop.f32.mrb[6].mxu0  ;;  %1741 = vmatprep.mubr.bf16.mxu1 %v586_v18  ;;  %v571_v33 = vmax.f32 %v495_v26, 0.0 }
  0xfd   : > { %v560_v30 = vmax.f32 %v452_v23, 0.0  ;;  %v455_v31 = vadd.f32 %v1700_v28, %v2266_v63  ;;  %v446_v32 = vpop.f32.mrb[7].mxu0  ;;  %1742 = vmatmul.mubr.bf16.vlgmr.msra.gmra.mrb[16].mxu1 %v587_v15  ;;  %v2280_v35 = vpack.c.bf16 %v573_v29, %v572_v20 }
  0xfe   : > { %v447_v34 = vadd.f32 %v2266_v63, %v446_v32  ;;  %v2282_v37 = vpack.c.bf16 %v571_v33, %v570_v25  ;;  %v1715_v38 = vpop.f32.mrb[4].mxu1  ;;  %v558_v39 = vmax.f32 %v444_v27, 0.0 }
  0xff   : > { %v561_v36 = vmax.f32 %v455_v31, 0.0  ;;  %v516_v41 = vadd.f32 %v1715_v38, %v2266_v63  ;;  %v507_v42 = vpop.f32.mrb[5].mxu1 }
 0x100   : > { %v559_v40 = vmax.f32 %v447_v34, 0.0  ;;  %v508_v44 = vadd.f32 %v2266_v63, %v507_v42  ;;  %v1716_v45 = vpop.f32.mrb[6].mxu1 }
 0x101   : > { %v589_v43 = vpack.c.bf16 %v561_v36, %v560_v30  ;;  %v576_v48 = vmax.f32 %v516_v41, 0.0  ;;  %v519_v49 = vadd.f32 %v1716_v45, %v2266_v63  ;;  %v510_v50 = vpop.f32.mrb[7].mxu1 }
 0x102   : > { %v588_v46 = vpack.c.bf16 %v559_v40, %v558_v39  ;;  %v1703_v47 = vpop.f32.mrb[8].mxu0  ;;  %v574_v53 = vmax.f32 %v508_v44, 0.0  ;;  %v511_v54 = vadd.f32 %v2266_v63, %v510_v50 }
 0x103   : > { %v468_v51 = vadd.f32 %v1703_v47, %v2266_v63  ;;  %v459_v52 = vpop.f32.mrb[9].mxu0  ;;  %v577_v57 = vmax.f32 %v519_v49, 0.0 }
 0x104   : > { %v460_v55 = vadd.f32 %v2266_v63, %v459_v52  ;;  %v1704_v56 = vpop.f32.mrb[10].mxu0  ;;  %1745 = vmatprep.mubr.bf16.mxu1 %v588_v46  ;;  %v575_v61 = vmax.f32 %v511_v54, 0.0 }
 0x105   : > { %v564_v58 = vmax.f32 %v468_v51, 0.0  ;;  %v471_v59 = vadd.f32 %v1704_v56, %v2266_v63  ;;  %v462_v60 = vpop.f32.mrb[11].mxu0  ;;  %1746 = vmatmul.mubr.bf16.gmra.mrb[20].mxu1 %v589_v43  ;;  %v597_v0 = vpack.c.bf16 %v577_v57, %v576_v48 }
 0x106   : > { %v463_v62 = vadd.f32 %v2266_v63, %v462_v60  ;;  %v596_v2 = vpack.c.bf16 %v575_v61, %v574_v53  ;;  %v1719_v3 = vpop.f32.mrb[8].mxu1  ;;  %v562_v4 = vmax.f32 %v460_v55, 0.0 }
 0x107   : > { %v565_v1 = vmax.f32 %v471_v59, 0.0  ;;  %v532_v6 = vadd.f32 %v1719_v3, %v2266_v63  ;;  %v523_v7 = vpop.f32.mrb[9].mxu1 }
 0x108   : > { %v563_v5 = vmax.f32 %v463_v62, 0.0  ;;  %v524_v9 = vadd.f32 %v2266_v63, %v523_v7  ;;  %v1720_v10 = vpop.f32.mrb[10].mxu1 }
 0x109   : > { %v591_v8 = vpack.c.bf16 %v565_v1, %v564_v58  ;;  %v580_v13 = vmax.f32 %v532_v6, 0.0  ;;  %v535_v14 = vadd.f32 %v1720_v10, %v2266_v63  ;;  %v526_v15 = vpop.f32.mrb[11].mxu1 }
 0x10a   : > { %v590_v11 = vpack.c.bf16 %v563_v5, %v562_v4  ;;  %v1707_v12 = vpop.f32.mrb[12].mxu0  ;;  %v578_v18 = vmax.f32 %v524_v9, 0.0  ;;  %v527_v19 = vadd.f32 %v2266_v63, %v526_v15 }
 0x10b   : > { %v484_v16 = vadd.f32 %v1707_v12, %v2266_v63  ;;  %v475_v17 = vpop.f32.mrb[13].mxu0  ;;  %v581_v22 = vmax.f32 %v535_v14, 0.0 }
 0x10c   : > { %v476_v20 = vadd.f32 %v2266_v63, %v475_v17  ;;  %v1708_v21 = vpop.f32.mrb[14].mxu0  ;;  %1749 = vmatprep.mubr.bf16.mxu1 %v590_v11  ;;  %v579_v26 = vmax.f32 %v527_v19, 0.0 }
 0x10d   : > { %v568_v23 = vmax.f32 %v484_v16, 0.0  ;;  %v487_v24 = vadd.f32 %v1708_v21, %v2266_v63  ;;  %v478_v25 = vpop.f32.mrb[15].mxu0  ;;  %1750 = vmatmul.mubr.bf16.gmra.mrb[24].mxu1 %v591_v8  ;;  %v599_v28 = vpack.c.bf16 %v581_v22, %v580_v13 }
 0x10e   : > { %v479_v27 = vadd.f32 %v2266_v63, %v478_v25  ;;  %v598_v30 = vpack.c.bf16 %v579_v26, %v578_v18  ;;  %v1723_v31 = vpop.f32.mrb[12].mxu1  ;;  %v566_v32 = vmax.f32 %v476_v20, 0.0 }
 0x10f   : > { %v569_v29 = vmax.f32 %v487_v24, 0.0  ;;  %v548_v34 = vadd.f32 %v1723_v31, %v2266_v63  ;;  %v539_v36 = vpop.f32.mrb[13].mxu1 }
 0x110   : > { %v567_v33 = vmax.f32 %v479_v27, 0.0  ;;  %v540_v39 = vadd.f32 %v2266_v63, %v539_v36  ;;  %v1724_v40 = vpop.f32.mrb[14].mxu1 }
 0x111   : > { %v593_v38 = vpack.c.bf16 %v569_v29, %v568_v23  ;;  %v584_v42 = vmax.f32 %v548_v34, 0.0  ;;  %v551_v43 = vadd.f32 %v1724_v40, %v2266_v63  ;;  %v542_v44 = vpop.f32.mrb[15].mxu1 }
 0x112   : > { %v592_v41 = vpack.c.bf16 %v567_v33, %v566_v32  ;;  %v582_v45 = vmax.f32 %v540_v39, 0.0  ;;  %v543_v46 = vadd.f32 %v2266_v63, %v542_v44  ;;  %v1879_v63 = vld [vmem:[%s2995_s5 + $0x30] sm:$0xff]  }
 0x113   : > { %v585_v47 = vmax.f32 %v551_v43, 0.0  ;;  %1785 = vmatprep.subr.bf16.mxu0 %v1879_v63 }
 0x114   : > { %1753 = vmatprep.mubr.bf16.mxu1 %v592_v41  ;;  %v583_v48 = vmax.f32 %v543_v46, 0.0  ;;  %1786 = vmatpush3.bf16.msra.mxu0 %v1879_v63 }
 0x115   : > { %1754 = vmatmul.mubr.bf16.gmra.mrb[28].mxu1 %v593_v38  ;;  %v601_v49 = vpack.c.bf16 %v585_v47, %v584_v42 }
 0x116   : > { %1757 = vmatprep.mubr.bf16.mxu1 %v2282_v37  ;;  %v600_v50 = vpack.c.bf16 %v583_v48, %v582_v45  ;;  %v1880_v37 = vld [vmem:[%s2995_s5 + $0x38] sm:$0xff]  }
 0x117   : > { %1787 = vmatprep.subr.bf16.mxu0 %v1880_v37 }
 0x118   : > { %1788 = vmatpush3.bf16.msra.mxu0 %v1880_v37 }
 0x11d   : > { %1758 = vmatmul.mubr.bf16.gmra.mrb[32].mxu1 %v2280_v35  ;;  %v2315_v35 = vld [vmem:[%s2994_s4] ss:$0 sm:$0xff] }
 0x11e   : > { %1761 = vmatprep.mubr.bf16.mxu1 %v596_v2 }
 0x125   : > { %1762 = vmatmul.mubr.bf16.gmra.mrb[36].mxu1 %v597_v0 }
 0x126   : > { %1765 = vmatprep.mubr.bf16.mxu1 %v598_v30 }
 0x12d   : > { %1766 = vmatmul.mubr.bf16.gmra.mrb[40].mxu1 %v599_v28 }
 0x12e   : > { %1769 = vmatprep.mubr.bf16.mxu1 %v600_v50 }
 0x135   : > { %1770 = vmatmul.mubr.bf16.gmra.mrb[44].mxu1 %v601_v49 }
 0x1d0   : > { %v1743_v51 = vpop.f32.mrb[16].mxu1 }
 0x1d1   : > { %v716_v52 = vadd.f32 %v1743_v51, %v2315_v35  ;;  %v707_v53 = vpop.f32.mrb[17].mxu1 }
 0x1d2   : > { %v708_v54 = vadd.f32 %v2315_v35, %v707_v53  ;;  %v1744_v55 = vpop.f32.mrb[18].mxu1 }
 0x1d3   : > { %v719_v56 = vadd.f32 %v1744_v55, %v2315_v35  ;;  %v710_v57 = vpop.f32.mrb[19].mxu1  ;;  %v836_v59 = vmax.f32 %v716_v52, 0.0 }
 0x1d4   : > { %v711_v58 = vadd.f32 %v2315_v35, %v710_v57  ;;  %v834_v61 = vmax.f32 %v708_v54, 0.0 }
 0x1d5   : > { %v837_v60 = vmax.f32 %v719_v56, 0.0 }
 0x1d6   : > { %v835_v62 = vmax.f32 %v711_v58, 0.0 }
 0x1d7   : > { %v867_v0 = vpack.c.bf16 %v837_v60, %v836_v59 }
 0x1d8   : > { %v866_v1 = vpack.c.bf16 %v835_v62, %v834_v61  ;;  %v1747_v2 = vpop.f32.mrb[20].mxu1 }
 0x1d9   : > { %v732_v3 = vadd.f32 %v1747_v2, %v2315_v35  ;;  %v723_v4 = vpop.f32.mrb[21].mxu1 }
 0x1da   : > { %v724_v5 = vadd.f32 %v2315_v35, %v723_v4  ;;  %v1748_v6 = vpop.f32.mrb[22].mxu1  ;;  %1789 = vmatprep.mubr.bf16.mxu0 %v866_v1 }
 0x1db   : > { %v735_v7 = vadd.f32 %v1748_v6, %v2315_v35  ;;  %v726_v8 = vpop.f32.mrb[23].mxu1  ;;  %1790 = vmatmul.mubr.bf16.vlgmr.msra.gmra.mrb[16].mxu0 %v867_v0  ;;  %v840_v10 = vmax.f32 %v732_v3, 0.0 }
 0x1dc   : > { %v727_v9 = vadd.f32 %v2315_v35, %v726_v8  ;;  %v838_v12 = vmax.f32 %v724_v5, 0.0 }
 0x1dd   : > { %v841_v11 = vmax.f32 %v735_v7, 0.0 }
 0x1de   : > { %v839_v13 = vmax.f32 %v727_v9, 0.0 }
 0x1df   : > { %v869_v14 = vpack.c.bf16 %v841_v11, %v840_v10 }
 0x1e0   : > { %v868_v15 = vpack.c.bf16 %v839_v13, %v838_v12  ;;  %v1751_v16 = vpop.f32.mrb[24].mxu1 }
 0x1e1   : > { %v748_v17 = vadd.f32 %v1751_v16, %v2315_v35  ;;  %v739_v18 = vpop.f32.mrb[25].mxu1 }
 0x1e2   : > { %v740_v19 = vadd.f32 %v2315_v35, %v739_v18  ;;  %v1752_v20 = vpop.f32.mrb[26].mxu1  ;;  %1793 = vmatprep.mubr.bf16.mxu0 %v868_v15 }
 0x1e3   : > { %v751_v21 = vadd.f32 %v1752_v20, %v2315_v35  ;;  %v742_v22 = vpop.f32.mrb[27].mxu1  ;;  %1794 = vmatmul.mubr.bf16.gmra.mrb[20].mxu0 %v869_v14  ;;  %v844_v24 = vmax.f32 %v748_v17, 0.0 }
 0x1e4   : > { %v743_v23 = vadd.f32 %v2315_v35, %v742_v22  ;;  %v842_v26 = vmax.f32 %v740_v19, 0.0 }
 0x1e5   : > { %v845_v25 = vmax.f32 %v751_v21, 0.0 }
 0x1e6   : > { %v843_v27 = vmax.f32 %v743_v23, 0.0 }
 0x1e7   : > { %v871_v28 = vpack.c.bf16 %v845_v25, %v844_v24 }
 0x1e8   : > { %v870_v29 = vpack.c.bf16 %v843_v27, %v842_v26  ;;  %v1755_v30 = vpop.f32.mrb[28].mxu1 }
 0x1e9   : > { %v764_v31 = vadd.f32 %v1755_v30, %v2315_v35  ;;  %v755_v32 = vpop.f32.mrb[29].mxu1 }
 0x1ea   : > { %v756_v33 = vadd.f32 %v2315_v35, %v755_v32  ;;  %v1756_v34 = vpop.f32.mrb[30].mxu1  ;;  %1797 = vmatprep.mubr.bf16.mxu0 %v870_v29 }
 0x1eb   : > { %v767_v36 = vadd.f32 %v1756_v34, %v2315_v35  ;;  %v758_v38 = vpop.f32.mrb[31].mxu1  ;;  %1798 = vmatmul.mubr.bf16.gmra.mrb[24].mxu0 %v871_v28  ;;  %v848_v40 = vmax.f32 %v764_v31, 0.0 }
 0x1ec   : > { %v759_v39 = vadd.f32 %v2315_v35, %v758_v38  ;;  %v846_v42 = vmax.f32 %v756_v33, 0.0 }
 0x1ed   : > { %v849_v41 = vmax.f32 %v767_v36, 0.0 }
 0x1ee   : > { %v847_v43 = vmax.f32 %v759_v39, 0.0  ;;  %v1114_v39 = vlaneseq }
 0x1ef   : > { %v873_v44 = vpack.c.bf16 %v849_v41, %v848_v40  ;;  %v2354_v41 = vld [vmem:[%s2996_s6] ss:$0 sm:$0xff] }
 0x1f0   : > { %v872_v45 = vpack.c.bf16 %v847_v43, %v846_v42  ;;  %v1759_v46 = vpop.f32.mrb[32].mxu1  ;;  %v2349_v40 = vand.u32 127, %v1114_v39 }
 0x1f1   : > { %v780_v47 = vadd.f32 %v1759_v46, %v2315_v35  ;;  %v771_v48 = vpop.f32.mrb[33].mxu1 }
 0x1f2   : > { %v772_v49 = vadd.f32 %v2315_v35, %v771_v48  ;;  %v1760_v50 = vpop.f32.mrb[34].mxu1  ;;  %1801 = vmatprep.mubr.bf16.mxu0 %v872_v45  ;;  %vm1116_vm1 = vcmp.lt.s32.totalorder %v2349_v40, 8 }
 0x1f3   : > { %v783_v63 = vadd.f32 %v1760_v50, %v2315_v35  ;;  %v774_v37 = vpop.f32.mrb[35].mxu1  ;;  %1802 = vmatmul.mubr.bf16.gmra.mrb[28].mxu0 %v873_v44  ;;  %v852_v52 = vmax.f32 %v780_v47, 0.0 }
 0x1f4   : > { %v775_v51 = vadd.f32 %v2315_v35, %v774_v37  ;;  %v850_v54 = vmax.f32 %v772_v49, 0.0 }
 0x1f5   : > { %v853_v53 = vmax.f32 %v783_v63, 0.0 }
 0x1f6   : > { %v851_v55 = vmax.f32 %v775_v51, 0.0 }
 0x1f7   : > { %v875_v56 = vpack.c.bf16 %v853_v53, %v852_v52 }
 0x1f8   : > { %v874_v57 = vpack.c.bf16 %v851_v55, %v850_v54  ;;  %v1763_v58 = vpop.f32.mrb[36].mxu1 }
 0x1f9   : > { %v796_v59 = vadd.f32 %v1763_v58, %v2315_v35  ;;  %v787_v60 = vpop.f32.mrb[37].mxu1 }
 0x1fa   : > { %v788_v61 = vadd.f32 %v2315_v35, %v787_v60  ;;  %v1764_v62 = vpop.f32.mrb[38].mxu1  ;;  %1805 = vmatprep.mubr.bf16.mxu0 %v874_v57 }
 0x1fb   : > { %v799_v0 = vadd.f32 %v1764_v62, %v2315_v35  ;;  %v790_v1 = vpop.f32.mrb[39].mxu1  ;;  %1806 = vmatmul.mubr.bf16.gmra.mrb[32].mxu0 %v875_v56  ;;  %v856_v3 = vmax.f32 %v796_v59, 0.0 }
 0x1fc   : > { %v791_v2 = vadd.f32 %v2315_v35, %v790_v1  ;;  %v854_v5 = vmax.f32 %v788_v61, 0.0 }
 0x1fd   : > { %v857_v4 = vmax.f32 %v799_v0, 0.0 }
 0x1fe   : > { %v855_v6 = vmax.f32 %v791_v2, 0.0 }
 0x1ff   : > { %v877_v7 = vpack.c.bf16 %v857_v4, %v856_v3 }
 0x200   : > { %v876_v8 = vpack.c.bf16 %v855_v6, %v854_v5  ;;  %v1767_v9 = vpop.f32.mrb[40].mxu1 }
 0x201   : > { %v812_v10 = vadd.f32 %v1767_v9, %v2315_v35  ;;  %v803_v11 = vpop.f32.mrb[41].mxu1 }
 0x202   : > { %v804_v12 = vadd.f32 %v2315_v35, %v803_v11  ;;  %v1768_v13 = vpop.f32.mrb[42].mxu1  ;;  %1809 = vmatprep.mubr.bf16.mxu0 %v876_v8 }
 0x203   : > { %v815_v14 = vadd.f32 %v1768_v13, %v2315_v35  ;;  %v806_v15 = vpop.f32.mrb[43].mxu1  ;;  %1810 = vmatmul.mubr.bf16.gmra.mrb[36].mxu0 %v877_v7  ;;  %v860_v17 = vmax.f32 %v812_v10, 0.0 }
 0x204   : > { %v807_v16 = vadd.f32 %v2315_v35, %v806_v15  ;;  %v858_v19 = vmax.f32 %v804_v12, 0.0 }
 0x205   : > { %v861_v18 = vmax.f32 %v815_v14, 0.0 }
 0x206   : > { %v859_v20 = vmax.f32 %v807_v16, 0.0 }
 0x207   : > { %v879_v21 = vpack.c.bf16 %v861_v18, %v860_v17 }
 0x208   : > { %v878_v22 = vpack.c.bf16 %v859_v20, %v858_v19  ;;  %v1771_v23 = vpop.f32.mrb[44].mxu1 }
 0x209   : > { %v828_v24 = vadd.f32 %v1771_v23, %v2315_v35  ;;  %v819_v25 = vpop.f32.mrb[45].mxu1 }
 0x20a   : > { %v820_v26 = vadd.f32 %v2315_v35, %v819_v25  ;;  %v1772_v27 = vpop.f32.mrb[46].mxu1  ;;  %1813 = vmatprep.mubr.bf16.mxu0 %v878_v22 }
 0x20b   : > { %v831_v28 = vadd.f32 %v1772_v27, %v2315_v35  ;;  %v822_v29 = vpop.f32.mrb[47].mxu1  ;;  %1814 = vmatmul.mubr.bf16.gmra.mrb[40].mxu0 %v879_v21  ;;  %v864_v31 = vmax.f32 %v828_v24, 0.0 }
 0x20c   : > { %v823_v30 = vadd.f32 %v2315_v35, %v822_v29  ;;  %v862_v33 = vmax.f32 %v820_v26, 0.0 }
 0x20d   : > { %v865_v32 = vmax.f32 %v831_v28, 0.0 }
 0x20e   : > { %v863_v34 = vmax.f32 %v823_v30, 0.0 }
 0x20f   : > { %v881_v36 = vpack.c.bf16 %v865_v32, %v864_v31 }
 0x210   : > { %v880_v38 = vpack.c.bf16 %v863_v34, %v862_v33 }
 0x212   : > { %1817 = vmatprep.mubr.bf16.mxu0 %v880_v38 }
 0x213   : > { %1818 = vmatmul.mubr.bf16.gmra.mrb[44].mxu0 %v881_v36 }
 0x2ae   : > { %v1791_v42 = vpop.f32.mrb[16].mxu0 }
 0x2af   : > { %v2358_v35 = vadd.f32 %v1791_v42, %v2354_v41  ;;  %v987_v43 = vpop.f32.mrb[17].mxu0 }
 0x2b0   : > { %v2361_v44 = vadd.f32 %v2354_v41, %v987_v43  ;;  %v1792_v45 = vpop.f32.mrb[18].mxu0 }
 0x2b1   : > { %v2364_v46 = vadd.f32 %v1792_v45, %v2354_v41  ;;  %v990_v47 = vpop.f32.mrb[19].mxu0  ;;  %v2369_v48 = vsel %vm1116_vm1, %v2358_v35, -1e+30 }
 0x2b2   : > { %v2372_v49 = vadd.f32 %v2354_v41, %v990_v47  ;;  %1153 = vmax.xlane.f32.xlu1 %v2369_v48  ;;  %v2378_v50 = vsel %vm1116_vm1, %v2361_v44, -1e+30 }
 0x2b3   : > { %1149 = vmax.xlane.f32.xlu0 %v2378_v50  ;;  %v2384_v63 = vsel %vm1116_vm1, %v2364_v46, -1e+30 }
 0x2b4   : > { %v2390_v51 = vsel %vm1116_vm1, %v2372_v49, -1e+30 }
 0x2b6   : > { %1155 = vmax.xlane.f32.xlu1 %v2384_v63  ;;  %v1795_v37 = vpop.f32.mrb[20].mxu0 }
 0x2b7   : > { %v2393_v52 = vadd.f32 %v1795_v37, %v2354_v41  ;;  %v1003_v53 = vpop.f32.mrb[21].mxu0  ;;  %1151 = vmax.xlane.f32.xlu0 %v2390_v51 }
 0x2b8   : > { %v1796_v54 = vpop.f32.mrb[22].mxu0  ;;  %v2405_v58 = vadd.f32 %v2354_v41, %v1003_v53 }
 0x2b9   : > { %v2397_v55 = vadd.f32 %v1796_v54, %v2354_v41  ;;  %v1006_v56 = vpop.f32.mrb[23].mxu0  ;;  %v2402_v57 = vsel %vm1116_vm1, %v2393_v52, -1e+30 }
 0x2ba   : > { %v2408_v59 = vadd.f32 %v2354_v41, %v1006_v56  ;;  %v2420_v62 = vsel %vm1116_vm1, %v2405_v58, -1e+30 }
 0x2bb   : > { %1161 = vmax.xlane.f32.xlu0 %v2402_v57  ;;  %v2414_v60 = vsel %vm1116_vm1, %v2397_v55, -1e+30 }
 0x2bc   : > { %1163 = vmax.xlane.f32.xlu1 %v2414_v60  ;;  %v2429_v2 = vsel %vm1116_vm1, %v2408_v59, -1e+30 }
 0x2be   : > { %v1799_v61 = vpop.f32.mrb[24].mxu0 }
 0x2bf   : > { %v2423_v0 = vadd.f32 %v1799_v61, %v2354_v41  ;;  %v1019_v1 = vpop.f32.mrb[25].mxu0  ;;  %1157 = vmax.xlane.f32.xlu0 %v2420_v62 }
 0x2c0   : > { %v1800_v3 = vpop.f32.mrb[26].mxu0  ;;  %1159 = vmax.xlane.f32.xlu1 %v2429_v2  ;;  %v2441_v7 = vadd.f32 %v2354_v41, %v1019_v1 }
 0x2c1   : > { %v2433_v4 = vadd.f32 %v1800_v3, %v2354_v41  ;;  %v1022_v5 = vpop.f32.mrb[27].mxu0  ;;  %v2438_v6 = vsel %vm1116_vm1, %v2423_v0, -1e+30 }
 0x2c2   : > { %v2444_v8 = vadd.f32 %v2354_v41, %v1022_v5  ;;  %v2456_v11 = vsel %vm1116_vm1, %v2441_v7, -1e+30 }
 0x2c3   : > { %1169 = vmax.xlane.f32.xlu0 %v2438_v6  ;;  %v2450_v9 = vsel %vm1116_vm1, %v2433_v4, -1e+30 }
 0x2c4   : > { %1171 = vmax.xlane.f32.xlu1 %v2450_v9  ;;  %v2465_v14 = vsel %vm1116_vm1, %v2444_v8, -1e+30 }
 0x2c6   : > { %v1803_v10 = vpop.f32.mrb[28].mxu0 }
 0x2c7   : > { %v2459_v12 = vadd.f32 %v1803_v10, %v2354_v41  ;;  %v1035_v13 = vpop.f32.mrb[29].mxu0  ;;  %1165 = vmax.xlane.f32.xlu0 %v2456_v11 }
 0x2c8   : > { %v1804_v15 = vpop.f32.mrb[30].mxu0  ;;  %1167 = vmax.xlane.f32.xlu1 %v2465_v14  ;;  %v2477_v19 = vadd.f32 %v2354_v41, %v1035_v13 }
 0x2c9   : > { %v2469_v16 = vadd.f32 %v1804_v15, %v2354_v41  ;;  %v1038_v17 = vpop.f32.mrb[31].mxu0  ;;  %v2474_v18 = vsel %vm1116_vm1, %v2459_v12, -1e+30 }
 0x2ca   : > { %v2480_v20 = vadd.f32 %v2354_v41, %v1038_v17  ;;  %v2492_v23 = vsel %vm1116_vm1, %v2477_v19, -1e+30 }
 0x2cb   : > { %1177 = vmax.xlane.f32.xlu0 %v2474_v18  ;;  %v2486_v21 = vsel %vm1116_vm1, %v2469_v16, -1e+30 }
 0x2cc   : > { %1179 = vmax.xlane.f32.xlu1 %v2486_v21  ;;  %v2501_v26 = vsel %vm1116_vm1, %v2480_v20, -1e+30 }
 0x2ce   : > { %v1807_v22 = vpop.f32.mrb[32].mxu0 }
 0x2cf   : > { %v2495_v24 = vadd.f32 %v1807_v22, %v2354_v41  ;;  %v1051_v25 = vpop.f32.mrb[33].mxu0  ;;  %1173 = vmax.xlane.f32.xlu0 %v2492_v23 }
 0x2d0   : > { %v1808_v27 = vpop.f32.mrb[34].mxu0  ;;  %1175 = vmax.xlane.f32.xlu1 %v2501_v26  ;;  %v2513_v31 = vadd.f32 %v2354_v41, %v1051_v25 }
 0x2d1   : > { %v2505_v28 = vadd.f32 %v1808_v27, %v2354_v41  ;;  %v1054_v29 = vpop.f32.mrb[35].mxu0  ;;  %v2510_v30 = vsel %vm1116_vm1, %v2495_v24, -1e+30 }
 0x2d2   : > { %3016 = vst [vmem:[#allocation6_spill] sm:$0xff] %v2513_v31  ;;  %v2516_v32 = vadd.f32 %v2354_v41, %v1054_v29  ;;  %v2528_v36 = vsel %vm1116_vm1, %v2513_v31, -1e+30 }
 0x2d3   : > { %3015 = vst [vmem:[#allocation5_spill] sm:$0xff] %v2505_v28  ;;  %1185 = vmax.xlane.f32.xlu0 %v2510_v30  ;;  %v2522_v33 = vsel %vm1116_vm1, %v2505_v28, -1e+30 }
 0x2d4   : > { %3017 = vst [vmem:[#allocation7_spill] sm:$0xff] %v2516_v32  ;;  %1187 = vmax.xlane.f32.xlu1 %v2522_v33  ;;  %v2537_v42 = vsel %vm1116_vm1, %v2516_v32, -1e+30 }
 0x2d6   : > { %v1811_v34 = vpop.f32.mrb[36].mxu0 }
 0x2d7   : > { %v2531_v38 = vadd.f32 %v1811_v34, %v2354_v41  ;;  %v1067_v39 = vpop.f32.mrb[37].mxu0  ;;  %1181 = vmax.xlane.f32.xlu0 %v2528_v36 }
 0x2d8   : > { %v1812_v43 = vpop.f32.mrb[38].mxu0  ;;  %1183 = vmax.xlane.f32.xlu1 %v2537_v42  ;;  %v2549_v53 = vadd.f32 %v2354_v41, %v1067_v39 }
 0x2d9   : > { %3018 = vst [vmem:[#allocation8_spill] sm:$0xff] %v2531_v38  ;;  %v2541_v45 = vadd.f32 %v1812_v43, %v2354_v41  ;;  %v1070_v47 = vpop.f32.mrb[39].mxu0  ;;  %v2546_v37 = vsel %vm1116_vm1, %v2531_v38, -1e+30 }
 0x2da   : > { %3020 = vst [vmem:[#allocation10_spill] sm:$0xff] %v2549_v53  ;;  %v2552_v54 = vadd.f32 %v2354_v41, %v1070_v47  ;;  %v2564_v1 = vsel %vm1116_vm1, %v2549_v53, -1e+30 }
 0x2db   : > { %3019 = vst [vmem:[#allocation9_spill] sm:$0xff] %v2541_v45  ;;  %1193 = vmax.xlane.f32.xlu0 %v2546_v37  ;;  %v2558_v56 = vsel %vm1116_vm1, %v2541_v45, -1e+30 }
 0x2dc   : > { %3021 = vst [vmem:[#allocation11_spill] sm:$0xff] %v2552_v54  ;;  %1195 = vmax.xlane.f32.xlu1 %v2558_v56  ;;  %v2573_v10 = vsel %vm1116_vm1, %v2552_v54, -1e+30 }
 0x2de   : > { %v1815_v61 = vpop.f32.mrb[40].mxu0 }
 0x2df   : > { %v2567_v3 = vadd.f32 %v1815_v61, %v2354_v41  ;;  %v1083_v5 = vpop.f32.mrb[41].mxu0  ;;  %1189 = vmax.xlane.f32.xlu0 %v2564_v1 }
 0x2e0   : > { %v1816_v13 = vpop.f32.mrb[42].mxu0  ;;  %1191 = vmax.xlane.f32.xlu1 %v2573_v10  ;;  %v2585_v25 = vadd.f32 %v2354_v41, %v1083_v5 }
 0x2e1   : > { %3022 = vst [vmem:[#allocation12_spill] sm:$0xff] %v2567_v3  ;;  %v2577_v15 = vadd.f32 %v1816_v13, %v2354_v41  ;;  %v1086_v17 = vpop.f32.mrb[43].mxu0  ;;  %v2582_v22 = vsel %vm1116_vm1, %v2567_v3, -1e+30 }
 0x2e2   : > { %3024 = vst [vmem:[#allocation14_spill] sm:$0xff] %v2585_v25  ;;  %v2588_v27 = vadd.f32 %v2354_v41, %v1086_v17  ;;  %v2600_v39 = vsel %vm1116_vm1, %v2585_v25, -1e+30 }
 0x2e3   : > { %3023 = vst [vmem:[#allocation13_spill] sm:$0xff] %v2577_v15  ;;  %1201 = vmax.xlane.f32.xlu0 %v2582_v22  ;;  %v2594_v29 = vsel %vm1116_vm1, %v2577_v15, -1e+30 }
 0x2e4   : > { %3025 = vst [vmem:[#allocation15_spill] sm:$0xff] %v2588_v27  ;;  %1203 = vmax.xlane.f32.xlu1 %v2594_v29  ;;  %v2606_v47 = vsel %vm1116_vm1, %v2588_v27, -1e+30 }
 0x2e6   : > { %v1819_v34 = vpop.f32.mrb[44].mxu0 }
 0x2e7   : > { %v1099_v43 = vpop.f32.mrb[45].mxu0  ;;  %1197 = vmax.xlane.f32.xlu0 %v2600_v39  ;;  %v2613_v17 = vadd.f32 %v1819_v34, %v2354_v41 }
 0x2e8   : > { %v2609_v61 = vadd.f32 %v2354_v41, %v1099_v43  ;;  %v1820_v5 = vpop.f32.mrb[46].mxu0  ;;  %1199 = vmax.xlane.f32.xlu1 %v2606_v47 }
 0x2e9   : > { %v1102_v13 = vpop.f32.mrb[47].mxu0  ;;  %3027 = vst [vmem:[#allocation17_spill] sm:$0xff] %v2613_v17  ;;  %v2625_v43 = vadd.f32 %v1820_v5, %v2354_v41  ;;  %v2636_v34 = vsel %vm1116_vm1, %v2613_v17, -1e+30 }
 0x2ea   : > { %3026 = vst [vmem:[#allocation16_spill] sm:$0xff] %v2609_v61  ;;  %v2616_v25 = vadd.f32 %v2354_v41, %v1102_v13  ;;  %v2621_v15 = vsel %vm1116_vm1, %v2609_v61, -1e+30 }
 0x2eb   : > { %1205 = vmax.xlane.f32.xlu0 %v2621_v15  ;;  %3029 = vst [vmem:[#allocation19_spill] sm:$0xff] %v2625_v43  ;;  %v2642_v13 = vsel %vm1116_vm1, %v2625_v43, -1e+30 }
 0x2ec   : > { %3028 = vst [vmem:[#allocation18_spill] sm:$0xff] %v2616_v25  ;;  %v2630_v27 = vsel %vm1116_vm1, %v2616_v25, -1e+30 }
 0x2ed   : > { %1207 = vmax.xlane.f32.xlu1 %v2630_v27 }
 0x2ef   : > { %1209 = vmax.xlane.f32.xlu0 %v2636_v34 }
 0x2f1   : > { %1211 = vmax.xlane.f32.xlu1 %v2642_v13 }
 0x33f   : > { %v1154_v41 = vpop.xlane.xlu1 %1153 }
 0x340   : > { %v1215_v5 = vsub.f32 %v2369_v48, %v1154_v41  ;;  %v1150_v25 = vpop.xlane.xlu0 %1149 }
 0x341   : > { %v1213_v61 = vsub.f32 %v2378_v50, %v1150_v25 }
 0x342   : > { %v1249_v3 = vmul.f32 1.442695, %v1215_v5 }
 0x343   : > { %v1245_v54 = vmul.f32 1.442695, %v1213_v61  ;;  %v1156_v53 = vpop.xlane.xlu1 %1155 }
 0x344   : > { %1881 = vpow2.f32 %v1249_v3  ;;  %v1216_v17 = vsub.f32 %v2384_v63, %v1156_v53  ;;  %v1152_v45 = vpop.xlane.xlu0 %1151 }
 0x345   : > { %v1214_v38 = vsub.f32 %v2390_v51, %v1152_v45  ;;  %1883 = vpow2.f32 %v1245_v54 }
 0x346   : > { %v1251_v32 = vmul.f32 1.442695, %v1216_v17 }
 0x347   : > { %v1247_v43 = vmul.f32 1.442695, %v1214_v38 }
 0x348   : > { %1885 = vpow2.f32 %v1251_v32  ;;  %v1162_v31 = vpop.xlane.xlu0 %1161 }
 0x349   : > { %v1219_v28 = vsub.f32 %v2402_v57, %v1162_v31  ;;  %v1164_v48 = vpop.xlane.xlu1 %1163  ;;  %1887 = vpow2.f32 %v1247_v43 }
 0x34a   : > { %v1220_v41 = vsub.f32 %v2414_v60, %v1164_v48 }
 0x34b   : > { %v1257_v50 = vmul.f32 1.442695, %v1219_v28 }
 0x34c   : > { %v1259_v25 = vmul.f32 1.442695, %v1220_v41  ;;  %v1158_v61 = vpop.xlane.xlu0 %1157 }
 0x34d   : > { %1889 = vpow2.f32 %v1257_v50  ;;  %v1217_v63 = vsub.f32 %v2420_v62, %v1158_v61  ;;  %v1160_v53 = vpop.xlane.xlu1 %1159 }
 0x34e   : > { %v2652_v3 = vpop.eup %1881  ;;  %v1218_v51 = vsub.f32 %v2429_v2, %v1160_v53  ;;  %1891 = vpow2.f32 %v1259_v25 }
 0x34f   : > { %v1253_v32 = vmul.f32 1.442695, %v1217_v63  ;;  %1313 = vadd.xlane.f32.xlu0 %v2652_v3  ;;  %v2656_v38 = vpop.eup %1883 }
 0x350   : > { %v1255_v57 = vmul.f32 1.442695, %v1218_v51  ;;  %v1170_v31 = vpop.xlane.xlu0 %1169 }
 0x351   : > { %1893 = vpow2.f32 %v1253_v32  ;;  %v1223_v60 = vsub.f32 %v2438_v6, %v1170_v31  ;;  %v1172_v28 = vpop.xlane.xlu1 %1171 }
 0x352   : > { %v2659_v45 = vpop.eup %1885  ;;  %v1224_v62 = vsub.f32 %v2450_v9, %v1172_v28  ;;  %1895 = vpow2.f32 %v1255_v57 }
 0x353   : > { %v1265_v54 = vmul.f32 1.442695, %v1223_v60  ;;  %1315 = vadd.xlane.f32.xlu1 %v2659_v45  ;;  %1309 = vadd.xlane.f32.xlu0 %v2656_v38  ;;  %v2665_v48 = vpop.eup %1887 }
 0x354   : > { %v1267_v2 = vmul.f32 1.442695, %v1224_v62  ;;  %v1166_v17 = vpop.xlane.xlu0 %1165 }
 0x355   : > { %1897 = vpow2.f32 %v1265_v54  ;;  %v1221_v43 = vsub.f32 %v2456_v11, %v1166_v17  ;;  %v1168_v5 = vpop.xlane.xlu1 %1167 }
 0x356   : > { %v1222_v6 = vsub.f32 %v2465_v14, %v1168_v5  ;;  %1899 = vpow2.f32 %v1267_v2 }
 0x357   : > { %v2668_v41 = vpop.eup %1889  ;;  %v1261_v50 = vmul.f32 1.442695, %v1221_v43  ;;  %1311 = vadd.xlane.f32.xlu1 %v2665_v48 }
 0x358   : > { %v1263_v9 = vmul.f32 1.442695, %v1222_v6  ;;  %1321 = vadd.xlane.f32.xlu0 %v2668_v41  ;;  %v1178_v25 = vpop.xlane.xlu0 %1177  ;;  %v2673_v11 = vpop.eup %1891 }
 0x359   : > { %1901 = vpow2.f32 %v1261_v50  ;;  %v1227_v61 = vsub.f32 %v2474_v18, %v1178_v25  ;;  %v1180_v63 = vpop.xlane.xlu1 %1179 }
 0x35a   : > { %v1228_v53 = vsub.f32 %v2486_v21, %v1180_v63  ;;  %1903 = vpow2.f32 %v1263_v9 }
 0x35b   : > { %v2676_v51 = vpop.eup %1893  ;;  %v1273_v14 = vmul.f32 1.442695, %v1227_v61  ;;  %1323 = vadd.xlane.f32.xlu1 %v2673_v11 }
 0x35c   : > { %v1275_v32 = vmul.f32 1.442695, %v1228_v53  ;;  %1317 = vadd.xlane.f32.xlu0 %v2676_v51  ;;  %v1174_v57 = vpop.xlane.xlu0 %1173  ;;  %v2681_v18 = vpop.eup %1895 }
 0x35d   : > { %1905 = vpow2.f32 %v1273_v14  ;;  %v1225_v31 = vsub.f32 %v2492_v23, %v1174_v57  ;;  %v1176_v60 = vpop.xlane.xlu1 %1175 }
 0x35e   : > { %v1226_v28 = vsub.f32 %v2501_v26, %v1176_v60  ;;  %1907 = vpow2.f32 %v1275_v32 }
 0x35f   : > { %v2684_v62 = vpop.eup %1897  ;;  %v1269_v21 = vmul.f32 1.442695, %v1225_v31  ;;  %1319 = vadd.xlane.f32.xlu1 %v2681_v18 }
 0x360   : > { %v1271_v54 = vmul.f32 1.442695, %v1226_v28  ;;  %1329 = vadd.xlane.f32.xlu0 %v2684_v62  ;;  %v1186_v2 = vpop.xlane.xlu0 %1185  ;;  %v2689_v23 = vpop.eup %1899 }
 0x361   : > { %1909 = vpow2.f32 %v1269_v21  ;;  %v1231_v17 = vsub.f32 %v2510_v30, %v1186_v2  ;;  %v1188_v43 = vpop.xlane.xlu1 %1187 }
 0x362   : > { %v1232_v5 = vsub.f32 %v2522_v33, %v1188_v43  ;;  %1911 = vpow2.f32 %v1271_v54 }
 0x363   : > { %v2692_v6 = vpop.eup %1901  ;;  %v1281_v26 = vmul.f32 1.442695, %v1231_v17  ;;  %1331 = vadd.xlane.f32.xlu1 %v2689_v23 }
 0x364   : > { %v1283_v50 = vmul.f32 1.442695, %v1232_v5  ;;  %1325 = vadd.xlane.f32.xlu0 %v2692_v6  ;;  %v1182_v9 = vpop.xlane.xlu0 %1181  ;;  %v2697_v30 = vpop.eup %1903 }
 0x365   : > { %1913 = vpow2.f32 %v1281_v26  ;;  %v1229_v25 = vsub.f32 %v2528_v36, %v1182_v9  ;;  %v1184_v61 = vpop.xlane.xlu1 %1183 }
 0x366   : > { %v1230_v63 = vsub.f32 %v2537_v42, %v1184_v61  ;;  %1915 = vpow2.f32 %v1283_v50 }
 0x367   : > { %v2700_v53 = vpop.eup %1905  ;;  %v1277_v33 = vmul.f32 1.442695, %v1229_v25  ;;  %1327 = vadd.xlane.f32.xlu1 %v2697_v30 }
 0x368   : > { %v1279_v14 = vmul.f32 1.442695, %v1230_v63  ;;  %1337 = vadd.xlane.f32.xlu0 %v2700_v53  ;;  %v1194_v32 = vpop.xlane.xlu0 %1193  ;;  %v2705_v36 = vpop.eup %1907 }
 0x369   : > { %1917 = vpow2.f32 %v1277_v33  ;;  %v1235_v57 = vsub.f32 %v2546_v37, %v1194_v32  ;;  %v1196_v31 = vpop.xlane.xlu1 %1195 }
 0x36a   : > { %v1236_v60 = vsub.f32 %v2558_v56, %v1196_v31  ;;  %1919 = vpow2.f32 %v1279_v14 }
 0x36b   : > { %v2708_v28 = vpop.eup %1909  ;;  %v1289_v42 = vmul.f32 1.442695, %v1235_v57  ;;  %1339 = vadd.xlane.f32.xlu1 %v2705_v36 }
 0x36c   : > { %v1291_v21 = vmul.f32 1.442695, %v1236_v60  ;;  %1333 = vadd.xlane.f32.xlu0 %v2708_v28  ;;  %v1190_v54 = vpop.xlane.xlu0 %1189  ;;  %v2713_v37 = vpop.eup %1911 }
 0x36d   : > { %1921 = vpow2.f32 %v1289_v42  ;;  %v1233_v2 = vsub.f32 %v2564_v1, %v1190_v54  ;;  %v1192_v17 = vpop.xlane.xlu1 %1191 }
 0x36e   : > { %v1234_v43 = vsub.f32 %v2573_v10, %v1192_v17  ;;  %1923 = vpow2.f32 %v1291_v21 }
 0x36f   : > { %v2716_v5 = vpop.eup %1913  ;;  %v1285_v56 = vmul.f32 1.442695, %v1233_v2  ;;  %1335 = vadd.xlane.f32.xlu1 %v2713_v37 }
 0x370   : > { %v1287_v26 = vmul.f32 1.442695, %v1234_v43  ;;  %1345 = vadd.xlane.f32.xlu0 %v2716_v5  ;;  %v1202_v50 = vpop.xlane.xlu0 %1201  ;;  %v2721_v1 = vpop.eup %1915 }
 0x371   : > { %1925 = vpow2.f32 %v1285_v56  ;;  %v1239_v9 = vsub.f32 %v2582_v22, %v1202_v50  ;;  %v1204_v25 = vpop.xlane.xlu1 %1203 }
 0x372   : > { %v1240_v61 = vsub.f32 %v2594_v29, %v1204_v25  ;;  %1927 = vpow2.f32 %v1287_v26 }
 0x373   : > { %v2724_v63 = vpop.eup %1917  ;;  %v1297_v10 = vmul.f32 1.442695, %v1239_v9  ;;  %1347 = vadd.xlane.f32.xlu1 %v2721_v1 }
 0x374   : > { %v1299_v33 = vmul.f32 1.442695, %v1240_v61  ;;  %1341 = vadd.xlane.f32.xlu0 %v2724_v63  ;;  %v1198_v14 = vpop.xlane.xlu0 %1197  ;;  %v2729_v22 = vpop.eup %1919 }
 0x375   : > { %1929 = vpow2.f32 %v1297_v10  ;;  %v1237_v32 = vsub.f32 %v2600_v39, %v1198_v14  ;;  %v1200_v57 = vpop.xlane.xlu1 %1199 }
 0x376   : > { %v1238_v31 = vsub.f32 %v2606_v47, %v1200_v57  ;;  %1931 = vpow2.f32 %v1299_v33 }
 0x377   : > { %v2732_v60 = vpop.eup %1921  ;;  %v1293_v29 = vmul.f32 1.442695, %v1237_v32  ;;  %1343 = vadd.xlane.f32.xlu1 %v2729_v22 }
 0x378   : > { %v1295_v42 = vmul.f32 1.442695, %v1238_v31  ;;  %1353 = vadd.xlane.f32.xlu0 %v2732_v60  ;;  %v1206_v21 = vpop.xlane.xlu0 %1205  ;;  %v2737_v2 = vpop.eup %1923 }
 0x379   : > { %1933 = vpow2.f32 %v1293_v29  ;;  %v1241_v54 = vsub.f32 %v2621_v15, %v1206_v21 }
 0x37a   : > { %v1208_v39 = vpop.xlane.xlu1 %1207  ;;  %1935 = vpow2.f32 %v1295_v42 }
 0x37b   : > { %v2739_v17 = vpop.eup %1925  ;;  %v1301_v43 = vmul.f32 1.442695, %v1241_v54  ;;  %v1242_v47 = vsub.f32 %v2630_v27, %v1208_v39  ;;  %1355 = vadd.xlane.f32.xlu1 %v2737_v2 }
 0x37c   : > { %1349 = vadd.xlane.f32.xlu0 %v2739_v17  ;;  %v1210_v56 = vpop.xlane.xlu0 %1209  ;;  %v2745_v9 = vpop.eup %1927 }
 0x37d   : > { %1937 = vpow2.f32 %v1301_v43  ;;  %v1303_v26 = vmul.f32 1.442695, %v1242_v47  ;;  %v1243_v50 = vsub.f32 %v2636_v34, %v1210_v56 }
 0x37e   : > { %v1212_v15 = vpop.xlane.xlu1 %1211 }
 0x37f   : > { %v2747_v25 = vpop.eup %1929  ;;  %1939 = vpow2.f32 %v1303_v26  ;;  %v1305_v61 = vmul.f32 1.442695, %v1243_v50  ;;  %v1244_v10 = vsub.f32 %v2642_v13, %v1212_v15  ;;  %1351 = vadd.xlane.f32.xlu1 %v2745_v9 }
 0x380   : > { %1361 = vadd.xlane.f32.xlu0 %v2747_v25  ;;  %v2752_v33 = vpop.eup %1931 }
 0x381   : > { %1941 = vpow2.f32 %v1305_v61  ;;  %v1307_v27 = vmul.f32 1.442695, %v1244_v10 }
 0x383   : > { %v2754_v14 = vpop.eup %1933  ;;  %1943 = vpow2.f32 %v1307_v27  ;;  %1363 = vadd.xlane.f32.xlu1 %v2752_v33 }
 0x384   : > { %1357 = vadd.xlane.f32.xlu0 %v2754_v14  ;;  %v2758_v34 = vpop.eup %1935 }
 0x387   : > { %v2760_v32 = vpop.eup %1937  ;;  %1359 = vadd.xlane.f32.xlu1 %v2758_v34 }
 0x388   : > { %1365 = vadd.xlane.f32.xlu0 %v2760_v32 }
 0x389   : > { %v2764_v13 = vpop.eup %1939 }
 0x38b   : > { %v2766_v57 = vpop.eup %1941  ;;  %1367 = vadd.xlane.f32.xlu1 %v2764_v13 }
 0x38c   : > { %1369 = vadd.xlane.f32.xlu0 %v2766_v57 }
 0x38d   : > { %v2770_v31 = vpop.eup %1943 }
 0x38f   : > { %1371 = vadd.xlane.f32.xlu1 %v2770_v31 }
 0x3dc   : > { %v1314_v29 = vpop.xlane.xlu0 %1313 }
 0x3dd   : > { %1945 = vrcp.f32 %v1314_v29 }
 0x3e0   : > { %v1316_v42 = vpop.xlane.xlu1 %1315  ;;  %v1310_v21 = vpop.xlane.xlu0 %1309 }
 0x3e1   : > { %1947 = vrcp.f32 %v1316_v42 }
 0x3e2   : > { %1949 = vrcp.f32 %v1310_v21 }
 0x3e4   : > { %v1312_v54 = vpop.xlane.xlu1 %1311 }
 0x3e5   : > { %1951 = vrcp.f32 %v1312_v54  ;;  %v1322_v39 = vpop.xlane.xlu0 %1321 }
 0x3e6   : > { %1953 = vrcp.f32 %v1322_v39 }
 0x3e7   : > { %v1946_v43 = vpop.eup %1945 }
 0x3e8   : > { %v1407_v47 = vmul.f32 %v1946_v43, %v2652_v3  ;;  %v1324_v56 = vpop.xlane.xlu1 %1323 }
 0x3e9   : > { %1955 = vrcp.f32 %v1324_v56  ;;  %v1318_v26 = vpop.xlane.xlu0 %1317 }
 0x3ea   : > { %v1439_v50 = vsel %vm1116_vm1, %v1407_v47, %v2358_v35  ;;  %1957 = vrcp.f32 %v1318_v26 }
 0x3eb   : > { %v1948_v15 = vpop.eup %1947  ;;  %1471 = vst [vmem:[%s2780_s18 + $0x10] sm:$0xff] %v1439_v50 }
 0x3ec   : > { %v1950_v61 = vpop.eup %1949  ;;  %v1408_v10 = vmul.f32 %v1948_v15, %v2659_v45  ;;  %v1320_v27 = vpop.xlane.xlu1 %1319 }
 0x3ed   : > { %v1405_v3 = vmul.f32 %v1950_v61, %v2656_v38  ;;  %1959 = vrcp.f32 %v1320_v27  ;;  %v1330_v29 = vpop.xlane.xlu0 %1329 }
 0x3ee   : > { %v1440_v35 = vsel %vm1116_vm1, %v1408_v10, %v2364_v46  ;;  %1961 = vrcp.f32 %v1330_v29 }
 0x3ef   : > { %v1952_v42 = vpop.eup %1951  ;;  %1472 = vst [vmem:[%s2780_s18 + $0x18] sm:$0xff] %v1440_v35  ;;  %v1437_v21 = vsel %vm1116_vm1, %v1405_v3, %v2361_v44 }
 0x3f0   : > { %v1954_v54 = vpop.eup %1953  ;;  %1469 = vst [vmem:[%s2780_s18] sm:$0xff] %v1437_v21  ;;  %v1406_v45 = vmul.f32 %v1952_v42, %v2665_v48  ;;  %v1332_v38 = vpop.xlane.xlu1 %1331 }
 0x3f1   : > { %v1411_v39 = vmul.f32 %v1954_v54, %v2668_v41  ;;  %1963 = vrcp.f32 %v1332_v38  ;;  %v1326_v43 = vpop.xlane.xlu0 %1325 }
 0x3f2   : > { %v1438_v46 = vsel %vm1116_vm1, %v1406_v45, %v2372_v49  ;;  %1965 = vrcp.f32 %v1326_v43 }
 0x3f3   : > { %v1956_v47 = vpop.eup %1955  ;;  %1470 = vst [vmem:[%s2780_s18 + $0x8] sm:$0xff] %v1438_v46  ;;  %v1443_v44 = vsel %vm1116_vm1, %v1411_v39, %v2393_v52 }
 0x3f4   : > { %v1958_v56 = vpop.eup %1957  ;;  %1475 = vst [vmem:[%s2780_s18 + $0x30] sm:$0xff] %v1443_v44  ;;  %v1412_v48 = vmul.f32 %v1956_v47, %v2673_v11  ;;  %v1328_v41 = vpop.xlane.xlu1 %1327 }
 0x3f5   : > { %v1409_v26 = vmul.f32 %v1958_v56, %v2676_v51  ;;  %1967 = vrcp.f32 %v1328_v41  ;;  %v1338_v50 = vpop.xlane.xlu0 %1337 }
 0x3f6   : > { %v1444_v49 = vsel %vm1116_vm1, %v1412_v48, %v2397_v55  ;;  %1969 = vrcp.f32 %v1338_v50 }
 0x3f7   : > { %v1960_v15 = vpop.eup %1959  ;;  %1476 = vst [vmem:[%s2780_s18 + $0x38] sm:$0xff] %v1444_v49  ;;  %v1441_v52 = vsel %vm1116_vm1, %v1409_v26, %v2405_v58 }
 0x3f8   : > { %v1962_v61 = vpop.eup %1961  ;;  %1473 = vst [vmem:[%s2780_s18 + $0x20] sm:$0xff] %v1441_v52  ;;  %v1410_v11 = vmul.f32 %v1960_v15, %v2681_v18  ;;  %v1340_v51 = vpop.xlane.xlu1 %1339  ;;  %v3030_v52 = vld [vmem:[#allocation5_spill] sm:$0xff] }
 0x3f9   : > { %v1415_v10 = vmul.f32 %v1962_v61, %v2684_v62  ;;  %1971 = vrcp.f32 %v1340_v51  ;;  %v1334_v27 = vpop.xlane.xlu0 %1333 }
 0x3fa   : > { %v1442_v55 = vsel %vm1116_vm1, %v1410_v11, %v2408_v59  ;;  %1973 = vrcp.f32 %v1334_v27  ;;  %v3031_v11 = vld [vmem:[#allocation6_spill] sm:$0xff] }
 0x3fb   : > { %v1964_v3 = vpop.eup %1963  ;;  %1474 = vst [vmem:[%s2780_s18 + $0x28] sm:$0xff] %v1442_v55  ;;  %v1447_v58 = vsel %vm1116_vm1, %v1415_v10, %v2423_v0  ;;  %v3032_v55 = vld [vmem:[#allocation7_spill] sm:$0xff] }
 0x3fc   : > { %v1966_v29 = vpop.eup %1965  ;;  %1479 = vst [vmem:[%s2780_s18 + $0x50] sm:$0xff] %v1447_v58  ;;  %v1416_v18 = vmul.f32 %v1964_v3, %v2689_v23  ;;  %v1336_v62 = vpop.xlane.xlu1 %1335 }
 0x3fd   : > { %v1413_v35 = vmul.f32 %v1966_v29, %v2692_v6  ;;  %1975 = vrcp.f32 %v1336_v62  ;;  %v1346_v42 = vpop.xlane.xlu0 %1345  ;;  %v3033_v29 = vld [vmem:[#allocation8_spill] sm:$0xff] }
 0x3fe   : > { %v1448_v59 = vsel %vm1116_vm1, %v1416_v18, %v2433_v4  ;;  %1977 = vrcp.f32 %v1346_v42 }
 0x3ff   : > { %v1968_v21 = vpop.eup %1967  ;;  %1480 = vst [vmem:[%s2780_s18 + $0x58] sm:$0xff] %v1448_v59  ;;  %v1445_v0 = vsel %vm1116_vm1, %v1413_v35, %v2441_v7  ;;  %v3034_v59 = vld [vmem:[#allocation9_spill] sm:$0xff] }
 0x400   : > { %v1970_v54 = vpop.eup %1969  ;;  %1477 = vst [vmem:[%s2780_s18 + $0x40] sm:$0xff] %v1445_v0  ;;  %v1414_v23 = vmul.f32 %v1968_v21, %v2697_v30  ;;  %v1348_v6 = vpop.xlane.xlu1 %1347 }
 0x401   : > { %v1419_v45 = vmul.f32 %v1970_v54, %v2700_v53  ;;  %1979 = vrcp.f32 %v1348_v6  ;;  %v1342_v38 = vpop.xlane.xlu0 %1341  ;;  %v3035_v54 = vld [vmem:[#allocation10_spill] sm:$0xff] }
 0x402   : > { %v1446_v4 = vsel %vm1116_vm1, %v1414_v23, %v2444_v8  ;;  %1981 = vrcp.f32 %v1342_v38 }
 0x403   : > { %v1972_v39 = vpop.eup %1971  ;;  %1478 = vst [vmem:[%s2780_s18 + $0x48] sm:$0xff] %v1446_v4  ;;  %v1451_v7 = vsel %vm1116_vm1, %v1419_v45, %v2459_v12  ;;  %v3036_v4 = vld [vmem:[#allocation11_spill] sm:$0xff] }
 0x404   : > { %v1974_v43 = vpop.eup %1973  ;;  %1483 = vst [vmem:[%s2780_s18 + $0x70] sm:$0xff] %v1451_v7  ;;  %v1420_v30 = vmul.f32 %v1972_v39, %v2705_v36  ;;  %v1344_v53 = vpop.xlane.xlu1 %1343 }
 0x405   : > { %v1417_v46 = vmul.f32 %v1974_v43, %v2708_v28  ;;  %1983 = vrcp.f32 %v1344_v53  ;;  %v1354_v47 = vpop.xlane.xlu0 %1353  ;;  %v3037_v43 = vld [vmem:[#allocation12_spill] sm:$0xff] }
 0x406   : > { %v1452_v8 = vsel %vm1116_vm1, %v1420_v30, %v2469_v16  ;;  %1985 = vrcp.f32 %v1354_v47  ;;  %v3038_v47 = vld [vmem:[#allocation13_spill] sm:$0xff] }
 0x407   : > { %v1976_v44 = vpop.eup %1975  ;;  %1484 = vst [vmem:[%s2780_s18 + $0x78] sm:$0xff] %v1452_v8  ;;  %v1449_v12 = vsel %vm1116_vm1, %v1417_v46, %v2477_v19 }
 0x408   : > { %v1978_v56 = vpop.eup %1977  ;;  %1481 = vst [vmem:[%s2780_s18 + $0x60] sm:$0xff] %v1449_v12  ;;  %v1418_v36 = vmul.f32 %v1976_v44, %v2713_v37  ;;  %v1356_v28 = vpop.xlane.xlu1 %1355  ;;  %v3039_v12 = vld [vmem:[#allocation14_spill] sm:$0xff] }
 0x409   : > { %v1423_v48 = vmul.f32 %v1978_v56, %v2716_v5  ;;  %1987 = vrcp.f32 %v1356_v28  ;;  %v1350_v41 = vpop.xlane.xlu0 %1349  ;;  %v3040_v28 = vld [vmem:[#allocation15_spill] sm:$0xff] }
 0x40a   : > { %v1450_v16 = vsel %vm1116_vm1, %v1418_v36, %v2480_v20  ;;  %1989 = vrcp.f32 %v1350_v41 }
 0x40b   : > { %v1980_v26 = vpop.eup %1979  ;;  %1482 = vst [vmem:[%s2780_s18 + $0x68] sm:$0xff] %v1450_v16  ;;  %v1455_v19 = vsel %vm1116_vm1, %v1423_v48, %v2495_v24  ;;  %v3041_v16 = vld [vmem:[#allocation16_spill] sm:$0xff] }
 0x40c   : > { %v1982_v50 = vpop.eup %1981  ;;  %1487 = vst [vmem:[%s2780_s18 + $0x90] sm:$0xff] %v1455_v19  ;;  %v1424_v37 = vmul.f32 %v1980_v26, %v2721_v1  ;;  %v1352_v5 = vpop.xlane.xlu1 %1351 }
 0x40d   : > { %v1421_v49 = vmul.f32 %v1982_v50, %v2724_v63  ;;  %1991 = vrcp.f32 %v1352_v5  ;;  %v1362_v15 = vpop.xlane.xlu0 %1361 }
 0x40e   : > { %v1456_v20 = vsel %vm1116_vm1, %v1424_v37, %v3030_v52  ;;  %1993 = vrcp.f32 %v1362_v15 }
 0x40f   : > { %v1984_v61 = vpop.eup %1983  ;;  %1488 = vst [vmem:[%s2780_s18 + $0x98] sm:$0xff] %v1456_v20  ;;  %v1453_v24 = vsel %vm1116_vm1, %v1421_v49, %v3031_v11  ;;  %v3043_v49 = vld [vmem:[#allocation17_spill] sm:$0xff] }
 0x410   : > { %v1986_v51 = vpop.eup %1985  ;;  %1485 = vst [vmem:[%s2780_s18 + $0x80] sm:$0xff] %v1453_v24  ;;  %v1422_v1 = vmul.f32 %v1984_v61, %v2729_v22  ;;  %v1364_v63 = vpop.xlane.xlu1 %1363 }
 0x411   : > { %v1427_v10 = vmul.f32 %v1986_v51, %v2732_v60  ;;  %1995 = vrcp.f32 %v1364_v63  ;;  %v1358_v27 = vpop.xlane.xlu0 %1357 }
 0x412   : > { %v1454_v3 = vsel %vm1116_vm1, %v1422_v1, %v3032_v55  ;;  %1997 = vrcp.f32 %v1358_v27 }
 0x413   : > { %v1988_v58 = vpop.eup %1987  ;;  %1486 = vst [vmem:[%s2780_s18 + $0x88] sm:$0xff] %v1454_v3  ;;  %v1459_v18 = vsel %vm1116_vm1, %v1427_v10, %v3033_v29 }
 0x414   : > { %v1990_v62 = vpop.eup %1989  ;;  %1491 = vst [vmem:[%s2780_s18 + $0xb0] sm:$0xff] %v1459_v18  ;;  %v1428_v22 = vmul.f32 %v1988_v58, %v2737_v2  ;;  %v1360_v60 = vpop.xlane.xlu1 %1359 }
 0x415   : > { %v1425_v35 = vmul.f32 %v1990_v62, %v2739_v17  ;;  %1999 = vrcp.f32 %v1360_v60  ;;  %v1366_v42 = vpop.xlane.xlu0 %1365 }
 0x416   : > { %v1460_v21 = vsel %vm1116_vm1, %v1428_v22, %v3034_v59  ;;  %2001 = vrcp.f32 %v1366_v42 }
 0x417   : > { %v1992_v0 = vpop.eup %1991  ;;  %1492 = vst [vmem:[%s2780_s18 + $0xb8] sm:$0xff] %v1460_v21  ;;  %v1457_v23 = vsel %vm1116_vm1, %v1425_v35, %v3035_v54 }
 0x418   : > { %v1994_v6 = vpop.eup %1993  ;;  %1489 = vst [vmem:[%s2780_s18 + $0xa0] sm:$0xff] %v1457_v23  ;;  %v1426_v2 = vmul.f32 %v1992_v0, %v2745_v9  ;;  %v1368_v17 = vpop.xlane.xlu1 %1367 }
 0x419   : > { %v1431_v45 = vmul.f32 %v1994_v6, %v2747_v25  ;;  %2003 = vrcp.f32 %v1368_v17  ;;  %v1370_v38 = vpop.xlane.xlu0 %1369 }
 0x41a   : > { %v1458_v39 = vsel %vm1116_vm1, %v1426_v2, %v3036_v4  ;;  %2005 = vrcp.f32 %v1370_v38 }
 0x41b   : > { %v1996_v7 = vpop.eup %1995  ;;  %1490 = vst [vmem:[%s2780_s18 + $0xa8] sm:$0xff] %v1458_v39  ;;  %v1463_v30 = vsel %vm1116_vm1, %v1431_v45, %v3037_v43 }
 0x41c   : > { %v1998_v53 = vpop.eup %1997  ;;  %1495 = vst [vmem:[%s2780_s18 + $0xd0] sm:$0xff] %v1463_v30  ;;  %v1432_v9 = vmul.f32 %v1996_v7, %v2752_v33  ;;  %v1372_v25 = vpop.xlane.xlu1 %1371 }
 0x41d   : > { %v1429_v46 = vmul.f32 %v1998_v53, %v2754_v14  ;;  %2007 = vrcp.f32 %v1372_v25 }
 0x41e   : > { %v1464_v8 = vsel %vm1116_vm1, %v1432_v9, %v3038_v47 }
 0x41f   : > { %v2000_v44 = vpop.eup %1999  ;;  %1496 = vst [vmem:[%s2780_s18 + $0xd8] sm:$0xff] %v1464_v8  ;;  %v1461_v56 = vsel %vm1116_vm1, %v1429_v46, %v3039_v12 }
 0x420   : > { %v2002_v36 = vpop.eup %2001  ;;  %1493 = vst [vmem:[%s2780_s18 + $0xc0] sm:$0xff] %v1461_v56  ;;  %v1430_v33 = vmul.f32 %v2000_v44, %v2758_v34 }
 0x421   : > { %v1433_v14 = vmul.f32 %v2002_v36, %v2760_v32  ;;  %v3042_v32 = vld [vmem:[#allocation18_spill] sm:$0xff] }
 0x422   : > { %v1462_v48 = vsel %vm1116_vm1, %v1430_v33, %v3040_v28 }
 0x423   : > { %v2004_v41 = vpop.eup %2003  ;;  %1494 = vst [vmem:[%s2780_s18 + $0xc8] sm:$0xff] %v1462_v48  ;;  %v1465_v26 = vsel %vm1116_vm1, %v1433_v14, %v3041_v16 }
 0x424   : > { %v2006_v19 = vpop.eup %2005  ;;  %1497 = vst [vmem:[%s2780_s18 + $0xe0] sm:$0xff] %v1465_v26  ;;  %v1434_v50 = vmul.f32 %v2004_v41, %v2764_v13  ;;  %v3044_v13 = vld [vmem:[#allocation19_spill] sm:$0xff] }
 0x425   : > { %v1435_v34 = vmul.f32 %v2006_v19, %v2766_v57 }
 0x426   : > { %v1466_v37 = vsel %vm1116_vm1, %v1434_v50, %v3042_v32 }
 0x427   : > { %v2008_v5 = vpop.eup %2007  ;;  %1498 = vst [vmem:[%s2780_s18 + $0xe8] sm:$0xff] %v1466_v37  ;;  %v1467_v15 = vsel %vm1116_vm1, %v1435_v34, %v3043_v49 }
 0x428   : > { %1499 = vst [vmem:[%s2780_s18 + $0xf0] sm:$0xff] %v1467_v15  ;;  %v1436_v52 = vmul.f32 %v2008_v5, %v2770_v31 }
 0x42a   : > { %v1468_v57 = vsel %vm1116_vm1, %v1436_v52, %v3044_v13 }
 0x42b   : > { %1500 = vst [vmem:[%s2780_s18 + $0xf8] sm:$0xff] %v1468_v57 }
 0x42c   : > { %2022 = shalt.err (!%p2019_p3)
}
 0x42d   : > { %s2023_s14 = scalar_lea.hbm %s2939_s23, 4096  ;;  %s2027_s17 = scalar_lea.hbm %s2997_s7, 8192 }
 0x42e   : > { %p2024_p4 = scmp.ne.s32.totalorder %s2939_s23, %s2023_s14  ;;  %p2028_p9 = scmp.lt.u32.totalorder %s2939_s23, %s2997_s7 }
 0x42f   : > { %p2029_p10 = scmp.lt.u32.totalorder %s2027_s17, %s2023_s14  ;;  %p2031_p12 = scmp.lt.u32.totalorder %s2023_s14, %s2939_s23 }
 0x430   : > { %p2025_p7 = pnand %p2024_p4, %p2154_p5 }
 0x431   : > { %p2030_p11 = por %p2029_p10, %p2028_p9 }
 0x432   : > { %p2026_p8 = pneg %p2025_p7 }
 0x433   : > { %p2032_p13 = por %p2031_p12, %p2030_p11 }
 0x435   : > { %p2033_p0 = pnand %p2032_p13, %p2026_p8 }
 0x437   : > { %2036 = shalt.err (!%p2033_p0)
}
 0x438   : > { %s2074_s22 = smov 128   ;;  %s2075_s21 = smov 8  }
 0x439   : > { %1823 = dma.vmem_to_hbm [thread:$0]  (%p2154_p5), %s2941_s20, 4096, %s2939_s23, %s2949_s28, %s2074_s22, %s2074_s22, %s2075_s21  }
 0x43a PF: > { %p1829_p1 = scmp.ge.s32.totalorder %s2071_s27, 2  ;;  %s1530_s29 = sand.u32 1, %s2059_s24  }
 0x43b   : > { %s1531_s8 = scalar_lea.sflag [#allocation3], %s1530_s29 }
 0x43c   : > { %p1826_p2 = pnand %p1829_p1, %p2158_p6 }
 0x43e   : > { %2054 = dma.done.wait (!%p1826_p2), %s1531_s8, 4096  }
 0x43f   : > { %2056 = vsyncadd (!%p1826_p2), %s1531_s8, 4294963200  ;;  %p17_p3 = scmp.ge.s32.totalorder %s2141_s30, 4   ;;  %s3045_s24 = smov %s2063_s25 }
 0x440   : > { %s3046_s25 = smov %s2067_s26  ;;  %s3047_s26 = smov %s2152_s10 }
 0x441   : > { %s3048_s27 = smov %s2141_s30  ;;  %19 = sbr.rel (!%p17_p3) target bundleno = 3 (0x3), region = 83 }
 0x448   :  { %1536 = vsyncpa [#allocation3], 1 }
 0x449   :  { %1538 = vsyncpa [#allocation3 + $0x1], 1 }

</bundles_post_ra>
